<compile_context>
chip_gen: v5e
topology: v5e:2x2
jax: 0.10.0
libtpu: 0.0.40
codegen_flags: <defaults>
</compile_context>

<pallas_src>
import numpy as np

import jax
import jax.numpy as jnp
from jax import lax
from jax.experimental import pallas as pl
from jax.experimental.pallas import tpu as pltpu

NEG_SLOPE = 0.2          # LeakyReLU slope assumed for ConvBlock
BN_EPS = 1e-5
LANE = 128


def _round_up(n, m=LANE):
    return ((n + m - 1) // m) * m


# ----------------------------- Pallas kernel --------------------------------
def encoder_kernel(x_ref, *refs):
    """Fused encoder: L x (dense matmul + bias + LeakyReLU), all VMEM-resident.

    x_ref                  : (N, Kp0)          f32  NCHW-flattened (lane-padded) input
    refs[2l], refs[2l+1]   : G_l (Kp_l, Mp_l) bf16,  bias_l (1, Mp_l) f32
    refs[2L + l]           : o_l (N, Mp_l)     f32  layer-l output (NCHW-flattened, padded)
    """
    num_layers = len(refs) // 3
    a = x_ref[...].astype(jnp.bfloat16)                       # bf16 MXU operand
    for l in range(num_layers):
        g_ref = refs[2 * l]
        b_ref = refs[2 * l + 1]
        o_ref = refs[2 * num_layers + l]
        # conv (+ folded BN scale) as one MXU matmul, f32 accumulate.
        y = jnp.dot(a, g_ref[...], preferred_element_type=jnp.float32)
        y = y + b_ref[...]                                    # folded conv+BN bias
        y = jnp.where(y >= 0.0, y, NEG_SLOPE * y)             # LeakyReLU(0.2), f32
        o_ref[...] = y                                        # lane-dense unmasked store
        if l + 1 < num_layers:
            a = y.astype(jnp.bfloat16)                        # feed next layer


# ----------------- parameter prep: conv+BN -> block-Toeplitz ------------------
def build_layer_operator(w_oihw, conv_b, gamma, beta, run_mean, run_var, H, W):
    """Lower Conv2d(3x3, s=2, p=1) + eval-mode BN into a dense matmul operator.

    Returns (numpy f32):
      G    : (Cin*H*W, Cout*Ho*Wo) — maps NCHW-flat input -> NCHW-flat output
             (BN scale folded into the columns)
      bias : (1, Cout*Ho*Wo)       — folded conv bias + BN shift
      out_shape : (Cout, Ho, Wo)
    """
    w = np.asarray(w_oihw, np.float32)                        # (Cout, Cin, 3, 3)
    Cout, Cin, KH, KW = w.shape
    Ho = (H + 2 - KH) // 2 + 1
    Wo = (W + 2 - KW) // 2 + 1

    # G6[ci, h, w, co, i, j] = w[co, ci, dy, dx] where h = 2i+dy-1, w = 2j+dx-1
    # (taps falling outside the image are simply omitted -> implicit zero padding).
    G6 = np.zeros((Cin, H, W, Cout, Ho, Wo), np.float32)
    for i in range(Ho):
        for dy in range(KH):
            h = 2 * i + dy - 1
            if h < 0 or h >= H:
                continue
            for j in range(Wo):
                for dx in range(KW):
                    wc = 2 * j + dx - 1
                    if wc < 0 or wc >= W:
                        continue
                    G6[:, h, wc, :, i, j] += w[:, :, dy, dx].T

    # Eval-mode BN fold: y = scale * (conv_out - mean) + beta, conv_out = Wx + b.
    scale = np.asarray(gamma, np.float32) / np.sqrt(np.asarray(run_var, np.float32) + BN_EPS)
    bias = (np.asarray(beta, np.float32)
            + (np.asarray(conv_b, np.float32) - np.asarray(run_mean, np.float32)) * scale)

    G = G6.reshape(Cin * H * W, Cout * Ho * Wo)
    G = G * np.repeat(scale, Ho * Wo)[None, :]                # fold scale into weights
    bias_flat = np.repeat(bias, Ho * Wo).reshape(1, Cout * Ho * Wo)

    return G, bias_flat, (Cout, Ho, Wo)


# ------------------------------- Encoder --------------------------------------
class EncoderPallas:
    def __init__(self, basic_c: int, cut_offs: int, layers_num: int, in_hw, key):
        H, W = in_hw
        self.in_flat = basic_c * H * W
        self.in_flat_pad = _round_up(self.in_flat)            # lane-align input width
        k_pad_prev = self.in_flat_pad

        self.raw_params = []     # kept for the pure-JAX reference check
        self.mats = []           # padded bf16 operators
        self.biases = []         # padded f32 biases
        self.out_shapes = []     # true (Cout, Ho, Wo) per layer
        self.out_pad = []        # padded flat width per layer

        for i in range(layers_num):
            cin = basic_c * 2 ** i if i < cut_offs else 2 ** cut_offs * basic_c
            cout = (basic_c * 2 ** (i + 1) if i < cut_offs
                    else 2 ** cut_offs * basic_c)
            key, kw, kb, kg, kbe, km, kv = jax.random.split(key, 7)
            w = 0.1 * jax.random.normal(kw, (cout, cin, 3, 3), jnp.float32)   # torch OIHW
            conv_b = 0.1 * jax.random.normal(kb, (cout,), jnp.float32)
            gamma = 1.0 + 0.1 * jax.random.normal(kg, (cout,), jnp.float32)
            beta = 0.1 * jax.random.normal(kbe, (cout,), jnp.float32)
            run_mean = 0.1 * jax.random.normal(km, (cout,), jnp.float32)
            run_var = 1.0 + 0.1 * jnp.abs(jax.random.normal(kv, (cout,), jnp.float32))
            self.raw_params.append(dict(w=w, b=conv_b, gamma=gamma, beta=beta,
                                        mean=run_mean, var=run_var))

            G, b_flat, oshape = build_layer_operator(w, conv_b, gamma, beta,
                                                     run_mean, run_var, H, W)
            K, M = G.shape
            Mp = _round_up(M)
            # Zero-pad K up to the previous layer's padded width and M up to a
            # 128-lane multiple: padded activation columns are exactly zero, so
            # the zero rows/cols never change the result.
            Gp = np.zeros((k_pad_prev, Mp), np.float32)
            Gp[:K, :M] = G
            bp = np.zeros((1, Mp), np.float32)
            bp[:, :M] = b_flat

            self.mats.append(jnp.asarray(Gp, dtype=jnp.bfloat16))
            self.biases.append(jnp.asarray(bp, dtype=jnp.float32))
            self.out_shapes.append(oshape)
            self.out_pad.append(Mp)
            k_pad_prev = Mp
            H, W = oshape[1], oshape[2]
        # drop_rate = 0.0 if i < cut_offs else 0.3 -> identity in eval mode.

    def __call__(self, x_nchw):
        """Matches PyTorch Encoder.forward: returns [x, l1(x), l2(l1(x)), ...] in NCHW."""
        N = x_nchw.shape[0]
        feats = [x_nchw]
        x_flat = x_nchw.reshape(N, -1).astype(jnp.float32)    # NCHW flatten (free)
        if self.in_flat_pad != self.in_flat:                  # lane-align if needed
            x_flat = jnp.pad(x_flat, ((0, 0), (0, self.in_flat_pad - self.in_flat)))

        operands = [x_flat]
        for G, b in zip(self.mats, self.biases):
            operands += [G, b]

        out_shape = [jax.ShapeDtypeStruct((N, mp), jnp.float32) for mp in self.out_pad]
        vmem = pltpu.MemorySpace.VMEM
        outs = pl.pallas_call(
            encoder_kernel,
            out_shape=out_shape,
            in_specs=[pl.BlockSpec(memory_space=vmem)] * len(operands),
            out_specs=[pl.BlockSpec(memory_space=vmem)] * len(out_shape),
        )(*operands)

        for o, (c, h, w) in zip(outs, self.out_shapes):
            feats.append(o[:, :c * h * w].reshape(N, c, h, w))  # drop lane padding, NCHW
        return feats


# --------------------- pure-JAX reference (for validation) --------------------
def reference_forward(x_nchw, raw_params):
    feats = [x_nchw]
    x = x_nchw
    for p in raw_params:
        y = lax.conv_general_dilated(
            x, p["w"], window_strides=(2, 2), padding=((1, 1), (1, 1)),
            dimension_numbers=("NCHW", "OIHW", "NCHW"))
        y = y + p["b"][None, :, None, None]
        scale = p["gamma"] / jnp.sqrt(p["var"] + BN_EPS)
        y = ((y - p["mean"][None, :, None, None]) * scale[None, :, None, None]
             + p["beta"][None, :, None, None])
        y = jnp.where(y >= 0.0, y, NEG_SLOPE * y)
        x = y
        feats.append(x)
    return feats


# --------------------------------- main ---------------------------------------
if __name__ == "__main__":
    basic_c, cut_offs, layers_num = 4, 2, 3
    N, H, W = 2, 16, 16
    x = jax.random.normal(jax.random.PRNGKey(0), (N, basic_c, H, W), jnp.float32)  # NCHW

    enc = EncoderPallas(basic_c, cut_offs, layers_num, (H, W), jax.random.PRNGKey(42))

    run = jax.jit(enc.__call__)
    feats = run(x)
    feats = [jax.block_until_ready(f) for f in feats]

    # Expected shapes: (2,4,16,16), (2,8,8,8), (2,16,4,4), (2,16,2,2)
    expected = [(2, 4, 16, 16), (2, 8, 8, 8), (2, 16, 4, 4), (2, 16, 2, 2)]
    assert [tuple(f.shape) for f in feats] == expected, [tuple(f.shape) for f in feats]
    assert all(bool(jnp.all(jnp.isfinite(f))) for f in feats)

    # Numerical parity against a pure-JAX f32 reference (bf16 MXU operands -> loose tol).
    ref = reference_forward(x, enc.raw_params)
    for got, want in zip(feats[1:], ref[1:]):
        np.testing.assert_allclose(np.asarray(got), np.asarray(want),
                                   rtol=5e-2, atol=5e-2)

    print("KERNEL_OK")
</pallas_src>

<mosaic_0001>
module attributes {stable_mosaic.version = 11 : i64} {
  func.func @encoder_kernel(%arg0: memref<2x1024xf32, #tpu.memory_space<vmem>>, %arg1: memref<1024x512xbf16, #tpu.memory_space<vmem>>, %arg2: memref<1x512xf32, #tpu.memory_space<vmem>>, %arg3: memref<512x256xbf16, #tpu.memory_space<vmem>>, %arg4: memref<1x256xf32, #tpu.memory_space<vmem>>, %arg5: memref<256x128xbf16, #tpu.memory_space<vmem>>, %arg6: memref<1x128xf32, #tpu.memory_space<vmem>>, %arg7: memref<2x512xf32, #tpu.memory_space<vmem>>, %arg8: memref<2x256xf32, #tpu.memory_space<vmem>>, %arg9: memref<2x128xf32, #tpu.memory_space<vmem>>) attributes {dimension_semantics = [], scalar_prefetch = 0 : i64, scratch_operands = 0 : i64, tpu.core_type = #tpu.core_type<tc>} {
    %c0 = arith.constant 0 : index
    %c0_0 = arith.constant 0 : index
    %0 = vector.load %arg0[%c0, %c0_0] : memref<2x1024xf32, #tpu.memory_space<vmem>>, vector<2x1024xf32>
    %1 = arith.truncf %0 : vector<2x1024xf32> to vector<2x1024xbf16>
    %c0_1 = arith.constant 0 : index
    %c0_2 = arith.constant 0 : index
    %2 = vector.load %arg1[%c0_1, %c0_2] : memref<1024x512xbf16, #tpu.memory_space<vmem>>, vector<1024x512xbf16>
    %cst = arith.constant dense<0.000000e+00> : vector<2x512xf32>
    %3 = tpu.matmul %1, %2, %cst {dimension_numbers = #tpu.dot_dimension_numbers<[1], [0], [0], [1], [0, 0, 1, 1], [], []>} : vector<2x1024xbf16>, vector<1024x512xbf16>, vector<2x512xf32> -> vector<2x512xf32>
    %c0_3 = arith.constant 0 : index
    %c0_4 = arith.constant 0 : index
    %4 = vector.load %arg2[%c0_3, %c0_4] : memref<1x512xf32, #tpu.memory_space<vmem>>, vector<1x512xf32>
    %5 = vector.broadcast %4 : vector<1x512xf32> to vector<2x512xf32>
    %6 = arith.addf %3, %5 : vector<2x512xf32>
    %cst_5 = arith.constant 0.000000e+00 : f32
    %7 = vector.broadcast %cst_5 : f32 to vector<2x512xf32>
    %8 = arith.cmpf oge, %6, %7 : vector<2x512xf32>
    %cst_6 = arith.constant 2.000000e-01 : f32
    %9 = vector.broadcast %cst_6 : f32 to vector<2x512xf32>
    %10 = arith.mulf %9, %6 : vector<2x512xf32>
    %11 = arith.select %8, %6, %10 : vector<2x512xi1>, vector<2x512xf32>
    %c0_7 = arith.constant 0 : index
    %c0_8 = arith.constant 0 : index
    %12 = vector.load %arg7[%c0_7, %c0_8] : memref<2x512xf32, #tpu.memory_space<vmem>>, vector<2x512xf32>
    tpu.vector_store %arg7[%c0_7, %c0_8], %11 {strides = array<i32>} : memref<2x512xf32, #tpu.memory_space<vmem>>, vector<2x512xf32>,
    %13 = arith.truncf %11 : vector<2x512xf32> to vector<2x512xbf16>
    %c0_9 = arith.constant 0 : index
    %c0_10 = arith.constant 0 : index
    %14 = vector.load %arg3[%c0_9, %c0_10] : memref<512x256xbf16, #tpu.memory_space<vmem>>, vector<512x256xbf16>
    %cst_11 = arith.constant dense<0.000000e+00> : vector<2x256xf32>
    %15 = tpu.matmul %13, %14, %cst_11 {dimension_numbers = #tpu.dot_dimension_numbers<[1], [0], [0], [1], [0, 0, 1, 1], [], []>} : vector<2x512xbf16>, vector<512x256xbf16>, vector<2x256xf32> -> vector<2x256xf32>
    %c0_12 = arith.constant 0 : index
    %c0_13 = arith.constant 0 : index
    %16 = vector.load %arg4[%c0_12, %c0_13] : memref<1x256xf32, #tpu.memory_space<vmem>>, vector<1x256xf32>
    %17 = vector.broadcast %16 : vector<1x256xf32> to vector<2x256xf32>
    %18 = arith.addf %15, %17 : vector<2x256xf32>
    %cst_14 = arith.constant 0.000000e+00 : f32
    %19 = vector.broadcast %cst_14 : f32 to vector<2x256xf32>
    %20 = arith.cmpf oge, %18, %19 : vector<2x256xf32>
    %cst_15 = arith.constant 2.000000e-01 : f32
    %21 = vector.broadcast %cst_15 : f32 to vector<2x256xf32>
    %22 = arith.mulf %21, %18 : vector<2x256xf32>
    %23 = arith.select %20, %18, %22 : vector<2x256xi1>, vector<2x256xf32>
    %c0_16 = arith.constant 0 : index
    %c0_17 = arith.constant 0 : index
    %24 = vector.load %arg8[%c0_16, %c0_17] : memref<2x256xf32, #tpu.memory_space<vmem>>, vector<2x256xf32>
    tpu.vector_store %arg8[%c0_16, %c0_17], %23 {strides = array<i32>} : memref<2x256xf32, #tpu.memory_space<vmem>>, vector<2x256xf32>,
    %25 = arith.truncf %23 : vector<2x256xf32> to vector<2x256xbf16>
    %c0_18 = arith.constant 0 : index
    %c0_19 = arith.constant 0 : index
    %26 = vector.load %arg5[%c0_18, %c0_19] : memref<256x128xbf16, #tpu.memory_space<vmem>>, vector<256x128xbf16>
    %cst_20 = arith.constant dense<0.000000e+00> : vector<2x128xf32>
    %27 = tpu.matmul %25, %26, %cst_20 {dimension_numbers = #tpu.dot_dimension_numbers<[1], [0], [0], [1], [0, 0, 1, 1], [], []>} : vector<2x256xbf16>, vector<256x128xbf16>, vector<2x128xf32> -> vector<2x128xf32>
    %c0_21 = arith.constant 0 : index
    %c0_22 = arith.constant 0 : index
    %28 = vector.load %arg6[%c0_21, %c0_22] : memref<1x128xf32, #tpu.memory_space<vmem>>, vector<1x128xf32>
    %29 = vector.broadcast %28 : vector<1x128xf32> to vector<2x128xf32>
    %30 = arith.addf %27, %29 : vector<2x128xf32>
    %cst_23 = arith.constant 0.000000e+00 : f32
    %31 = vector.broadcast %cst_23 : f32 to vector<2x128xf32>
    %32 = arith.cmpf oge, %30, %31 : vector<2x128xf32>
    %cst_24 = arith.constant 2.000000e-01 : f32
    %33 = vector.broadcast %cst_24 : f32 to vector<2x128xf32>
    %34 = arith.mulf %33, %30 : vector<2x128xf32>
    %35 = arith.select %32, %30, %34 : vector<2x128xi1>, vector<2x128xf32>
    %c0_25 = arith.constant 0 : index
    %c0_26 = arith.constant 0 : index
    %36 = vector.load %arg9[%c0_25, %c0_26] : memref<2x128xf32, #tpu.memory_space<vmem>>, vector<2x128xf32>
    tpu.vector_store %arg9[%c0_25, %c0_26], %35 {strides = array<i32>} : memref<2x128xf32, #tpu.memory_space<vmem>>, vector<2x128xf32>,
    return
  }
}

</mosaic_0001>

<bundles_post_ra>
// kernel: a_call__.1
= control target key start
LH: loop header
LB: loop body
LE: loop exit
PB: predicated region body
PF: predicated region fallthrough
CT: control target
= control target key end

     0   :  { %15 = vsyncpa [#allocation3], 0  ;;  %s4742_s0 = inlined_call_operand.vmem [shape: f32[2,1024], index: 0, kind: input, shape index: {}]   ;;  %s4743_s1 = inlined_call_operand.hbm [shape: bf16[1024,512], index: 1, kind: input, shape index: {}]   ;;  %s4744_s2 = inlined_call_operand.vmem [shape: f32[1,512], index: 2, kind: input, shape index: {}]   ;;  %s4745_s3 = inlined_call_operand.hbm [shape: bf16[512,256], index: 3, kind: input, shape index: {}]   ;;  %s4746_s4 = inlined_call_operand.vmem [shape: f32[1,256], index: 4, kind: input, shape index: {}]   ;;  %s4747_s5 = inlined_call_operand.vmem [shape: bf16[256,128], index: 5, kind: input, shape index: {}]   ;;  %s4748_s6 = inlined_call_operand.vmem [shape: f32[1,128], index: 6, kind: input, shape index: {}]   ;;  %s4749_s7 = inlined_call_operand.vmem [shape: f32[2,512], index: 7, kind: output, shape index: {0}]   ;;  %s4750_s8 = inlined_call_operand.vmem [shape: f32[2,256], index: 8, kind: output, shape index: {1}]   ;;  %s4751_s9 = inlined_call_operand.vmem [shape: f32[2,128], index: 9, kind: output, shape index: {2}]  }
   0x1   :  { %s23_s11 = sshll.u32 %s4743_s1, 4  ;;  %s24_s11 = int_to_ptr.hbm [resolvable:$true] %s23_s11 }
   0x2   :  { %16 = vsyncpa [#allocation5], 0  ;;  %s4509_s12 = smov [#allocation2]   ;;  %s38_s16 = sshll.u32 %s4745_s3, 4  ;;  %s39_s16 = int_to_ptr.hbm [resolvable:$true] %s38_s16 }
   0x3   :  { %s25_s13 = sshll.u32 %s4509_s12, 4  ;;  %s4510_s17 = smov 256   ;;  %s26_s13 = int_to_ptr.vmem [resolvable:$true] %s25_s13 }
   0x4   :  { %s4511_s18 = smov 16   ;;  %s4512_s19 = smov [#allocation4]  }
   0x5   :  { %31 = dma.hbm_to_vmem [thread:$0]  %s24_s11, 32768, %s26_s13, [#allocation3], %s4510_s17, %s4510_s17, %s4511_s18  }
   0x6   :  { %s40_s20 = sshll.u32 %s4512_s19, 4  ;;  %s4513_s21 = smov 128   ;;  %s41_s20 = int_to_ptr.vmem [resolvable:$true] %s40_s20 }
   0x7   :  { %s4514_s22 = smov 8  }
   0x8   :  { %46 = dma.hbm_to_vmem [thread:$0]  %s39_s16, 8192, %s41_s20, [#allocation5], %s4513_s21, %s4513_s21, %s4514_s22  }
   0x9   :  { %4505 = dma.done.wait [#allocation3], 32768  }
   0xa   :  { %4506 = vsyncadd [#allocation3], 4294934528 }
   0xb   :  { %4507 = dma.done.wait [#allocation5], 8192  }
   0xc   :  { %4508 = vsyncadd [#allocation5], 4294959104  ;;  %v2883_v0 = vld [vmem:[#allocation2 + $0xe0] sm:$0xf]  ;;  %v4143_v1 = vld [vmem:[#allocation2 + $0xec] sm:$0xf0] }
   0xd   :  { %v3011_v2 = vld [vmem:[#allocation2 + $0x1e0] sm:$0xf]  ;;  %v2884_v3 = vor.u32 %v4143_v1, %v2883_v0  ;;  %v4175_v4 = vld [vmem:[#allocation2 + $0x1ec] sm:$0xf0]  ;;  %vm2073_vm2 = vcmask 1041408   ;;  %vm2075_vm5 = vcmask 1045508  }
   0xe   :  { %v3139_v5 = vld [vmem:[#allocation2 + $0x2e0] sm:$0xf]  ;;  %v4207_v6 = vld [vmem:[#allocation2 + $0x2ec] sm:$0xf0]  ;;  %v3012_v7 = vor.u32 %v4175_v4, %v3011_v2  ;;  %vm2077_vm6 = vcmask 1043456  }
   0xf   :  { %v3140_v8 = vor.u32 %v4207_v6, %v3139_v5  ;;  %v3267_v9 = vld [vmem:[#allocation2 + $0x3e0] sm:$0xf]  ;;  %v4239_v10 = vld [vmem:[#allocation2 + $0x3ec] sm:$0xf0]  ;;  %1638 = vmatpush.bf16.msra.mxu0 %v2884_v3 }
  0x10   :  { %v2867_v11 = vld [vmem:[#allocation2 + $0xc0] sm:$0xf]  ;;  %v3268_v12 = vor.u32 %v4239_v10, %v3267_v9  ;;  %v4139_v13 = vld [vmem:[#allocation2 + $0xcc] sm:$0xf0]  ;;  %1651 = vmatpush.bf16.msra.mxu1 %v3012_v7 }
  0x11   :  { %v2995_v14 = vld [vmem:[#allocation2 + $0x1c0] sm:$0xf]  ;;  %v4171_v15 = vld [vmem:[#allocation2 + $0x1cc] sm:$0xf0]  ;;  %1664 = vmatpush.bf16.msra.mxu2 %v3140_v8  ;;  %v2868_v16 = vor.u32 %v4139_v13, %v2867_v11 }
  0x12   :  { %v2996_v17 = vor.u32 %v4171_v15, %v2995_v14  ;;  %v3123_v18 = vld [vmem:[#allocation2 + $0x2c0] sm:$0xf]  ;;  %v4203_v19 = vld [vmem:[#allocation2 + $0x2cc] sm:$0xf0]  ;;  %1677 = vmatpush.bf16.msra.mxu3 %v3268_v12 }
  0x13   :  { %v3251_v20 = vld [vmem:[#allocation2 + $0x3c0] sm:$0xf]  ;;  %v3124_v21 = vor.u32 %v4203_v19, %v3123_v18  ;;  %v4235_v22 = vld [vmem:[#allocation2 + $0x3cc] sm:$0xf0]  ;;  %1639 = vmatpush.bf16.msra.mxu0 %v2868_v16 }
  0x14   :  { %v2851_v23 = vld [vmem:[#allocation2 + $0xa0] sm:$0xf]  ;;  %v4135_v24 = vld [vmem:[#allocation2 + $0xac] sm:$0xf0]  ;;  %v3252_v25 = vor.u32 %v4235_v22, %v3251_v20  ;;  %1652 = vmatpush.bf16.msra.mxu1 %v2996_v17 }
  0x15   :  { %v2979_v26 = vld [vmem:[#allocation2 + $0x1a0] sm:$0xf]  ;;  %v4167_v27 = vld [vmem:[#allocation2 + $0x1ac] sm:$0xf0]  ;;  %v2852_v29 = vor.u32 %v4135_v24, %v2851_v23  ;;  %1665 = vmatpush.bf16.msra.mxu2 %v3124_v21 }
  0x16   :  { %v3107_v28 = vld [vmem:[#allocation2 + $0x2a0] sm:$0xf]  ;;  %v4199_v30 = vld [vmem:[#allocation2 + $0x2ac] sm:$0xf0]  ;;  %v2980_v33 = vor.u32 %v4167_v27, %v2979_v26  ;;  %1678 = vmatpush.bf16.msra.mxu3 %v3252_v25 }
  0x17   :  { %v3235_v31 = vld [vmem:[#allocation2 + $0x3a0] sm:$0xf]  ;;  %v4231_v32 = vld [vmem:[#allocation2 + $0x3ac] sm:$0xf0]  ;;  %v3108_v34 = vor.u32 %v4199_v30, %v3107_v28  ;;  %1640 = vmatpush.bf16.msra.mxu0 %v2852_v29 }
  0x18   :  { %v2835_v35 = vld [vmem:[#allocation2 + $0x80] sm:$0xf]  ;;  %v4131_v36 = vld [vmem:[#allocation2 + $0x8c] sm:$0xf0]  ;;  %v3236_v38 = vor.u32 %v4231_v32, %v3235_v31  ;;  %1653 = vmatpush.bf16.msra.mxu1 %v2980_v33 }
  0x19   :  { %v2963_v37 = vld [vmem:[#allocation2 + $0x180] sm:$0xf]  ;;  %v4163_v39 = vld [vmem:[#allocation2 + $0x18c] sm:$0xf0]  ;;  %v2836_v44 = vor.u32 %v4131_v36, %v2835_v35  ;;  %1666 = vmatpush.bf16.msra.mxu2 %v3108_v34 }
  0x1a   :  { %v3091_v40 = vld [vmem:[#allocation2 + $0x280] sm:$0xf]  ;;  %v4195_v41 = vld [vmem:[#allocation2 + $0x28c] sm:$0xf0]  ;;  %v2964_v45 = vor.u32 %v4163_v39, %v2963_v37  ;;  %1679 = vmatpush.bf16.msra.mxu3 %v3236_v38 }
  0x1b   :  { %v3219_v42 = vld [vmem:[#allocation2 + $0x380] sm:$0xf]  ;;  %v4227_v43 = vld [vmem:[#allocation2 + $0x38c] sm:$0xf0]  ;;  %v3092_v46 = vor.u32 %v4195_v41, %v3091_v40  ;;  %1641 = vmatpush.bf16.msra.mxu0 %v2836_v44 }
  0x1c   :  { %v2819_v47 = vld [vmem:[#allocation2 + $0x60] sm:$0xf]  ;;  %v4127_v48 = vld [vmem:[#allocation2 + $0x6c] sm:$0xf0]  ;;  %v3220_v50 = vor.u32 %v4227_v43, %v3219_v42  ;;  %1654 = vmatpush.bf16.msra.mxu1 %v2964_v45 }
  0x1d   :  { %v2947_v49 = vld [vmem:[#allocation2 + $0x160] sm:$0xf]  ;;  %v4159_v51 = vld [vmem:[#allocation2 + $0x16c] sm:$0xf0]  ;;  %v2820_v56 = vor.u32 %v4127_v48, %v2819_v47  ;;  %1667 = vmatpush.bf16.msra.mxu2 %v3092_v46 }
  0x1e   :  { %v3075_v52 = vld [vmem:[#allocation2 + $0x260] sm:$0xf]  ;;  %v4191_v53 = vld [vmem:[#allocation2 + $0x26c] sm:$0xf0]  ;;  %v2948_v57 = vor.u32 %v4159_v51, %v2947_v49  ;;  %1680 = vmatpush.bf16.msra.mxu3 %v3220_v50 }
  0x1f   :  { %v3203_v54 = vld [vmem:[#allocation2 + $0x360] sm:$0xf]  ;;  %v4223_v55 = vld [vmem:[#allocation2 + $0x36c] sm:$0xf0]  ;;  %v3076_v58 = vor.u32 %v4191_v53, %v3075_v52  ;;  %1642 = vmatpush.bf16.msra.mxu0 %v2820_v56 }
  0x20   :  { %v2803_v59 = vld [vmem:[#allocation2 + $0x40] sm:$0xf]  ;;  %v4123_v60 = vld [vmem:[#allocation2 + $0x4c] sm:$0xf0]  ;;  %v3204_v62 = vor.u32 %v4223_v55, %v3203_v54  ;;  %1655 = vmatpush.bf16.msra.mxu1 %v2948_v57 }
  0x21   :  { %v2931_v61 = vld [vmem:[#allocation2 + $0x140] sm:$0xf]  ;;  %v4155_v63 = vld [vmem:[#allocation2 + $0x14c] sm:$0xf0]  ;;  %v2804_v4 = vor.u32 %v4123_v60, %v2803_v59  ;;  %1668 = vmatpush.bf16.msra.mxu2 %v3076_v58  ;;  %v61_v59 = vld [vmem:[%s4742_s0] sm:$0xff] }
  0x22   :  { %v3059_v0 = vld [vmem:[#allocation2 + $0x240] sm:$0xf]  ;;  %v4187_v1 = vld [vmem:[#allocation2 + $0x24c] sm:$0xf0]  ;;  %v2932_v5 = vor.u32 %v4155_v63, %v2931_v61  ;;  %1681 = vmatpush.bf16.msra.mxu3 %v3204_v62  ;;  %65 = vst [vmem:[#allocation1] ss:$4 sm:$0xff] %v61_v59 }
  0x23   :  { %v3187_v2 = vld [vmem:[#allocation2 + $0x340] sm:$0xf]  ;;  %v4219_v3 = vld [vmem:[#allocation2 + $0x34c] sm:$0xf0]  ;;  %v3060_v6 = vor.u32 %v4187_v1, %v3059_v0  ;;  %1643 = vmatpush.bf16.msra.mxu0 %v2804_v4 }
  0x24   :  { %v2787_v7 = vld [vmem:[#allocation2 + $0x20] sm:$0xf]  ;;  %v4119_v8 = vld [vmem:[#allocation2 + $0x2c] sm:$0xf0]  ;;  %v3188_v10 = vor.u32 %v4219_v3, %v3187_v2  ;;  %1656 = vmatpush.bf16.msra.mxu1 %v2932_v5 }
  0x25   :  { %v2915_v9 = vld [vmem:[#allocation2 + $0x120] sm:$0xf]  ;;  %v4151_v11 = vld [vmem:[#allocation2 + $0x12c] sm:$0xf0]  ;;  %v2788_v16 = vor.u32 %v4119_v8, %v2787_v7  ;;  %1669 = vmatpush.bf16.msra.mxu2 %v3060_v6 }
  0x26   :  { %v3043_v12 = vld [vmem:[#allocation2 + $0x220] sm:$0xf]  ;;  %v4183_v13 = vld [vmem:[#allocation2 + $0x22c] sm:$0xf0]  ;;  %v2916_v19 = vor.u32 %v4151_v11, %v2915_v9  ;;  %1682 = vmatpush.bf16.msra.mxu3 %v3188_v10 }
  0x27   :  { %v3171_v14 = vld [vmem:[#allocation2 + $0x320] sm:$0xf]  ;;  %v4215_v15 = vld [vmem:[#allocation2 + $0x32c] sm:$0xf0]  ;;  %v3044_v20 = vor.u32 %v4183_v13, %v3043_v12  ;;  %1644 = vmatpush.bf16.msra.mxu0 %v2788_v16 }
  0x28   :  { %v2771_v17 = vld [vmem:[#allocation2] sm:$0xf]  ;;  %v4115_v18 = vld [vmem:[#allocation2 + $0xc] sm:$0xf0]  ;;  %v3172_v24 = vor.u32 %v4215_v15, %v3171_v14  ;;  %1657 = vmatpush.bf16.msra.mxu1 %v2916_v19 }
  0x29   :  { %v2899_v21 = vld [vmem:[#allocation2 + $0x100] sm:$0xf]  ;;  %v4147_v22 = vld [vmem:[#allocation2 + $0x10c] sm:$0xf0]  ;;  %v2772_v31 = vor.u32 %v4115_v18, %v2771_v17  ;;  %1670 = vmatpush.bf16.msra.mxu2 %v3044_v20 }
  0x2a   :  { %v3027_v23 = vld [vmem:[#allocation2 + $0x200] sm:$0xf]  ;;  %v4179_v25 = vld [vmem:[#allocation2 + $0x20c] sm:$0xf0]  ;;  %v2900_v35 = vor.u32 %v4147_v22, %v2899_v21  ;;  %1683 = vmatpush.bf16.msra.mxu3 %v3172_v24 }
  0x2b   :  { %v3155_v26 = vld [vmem:[#allocation2 + $0x300] sm:$0xf]  ;;  %v4211_v27 = vld [vmem:[#allocation2 + $0x30c] sm:$0xf0]  ;;  %v3028_v36 = vor.u32 %v4179_v25, %v3027_v23  ;;  %1645 = vmatpush.bf16.msra.mxu0 %v2772_v31 }
  0x2c   :  { %v3395_v28 = vld [vmem:[#allocation2 + $0x4e0] sm:$0xf]  ;;  %v4271_v29 = vld [vmem:[#allocation2 + $0x4ec] sm:$0xf0]  ;;  %v3156_v39 = vor.u32 %v4211_v27, %v3155_v26  ;;  %1658 = vmatpush.bf16.msra.mxu1 %v2900_v35 }
  0x2d   :  { %v3523_v30 = vld [vmem:[#allocation2 + $0x5e0] sm:$0xf]  ;;  %v4303_v32 = vld [vmem:[#allocation2 + $0x5ec] sm:$0xf0]  ;;  %v3396_v40 = vor.u32 %v4271_v29, %v3395_v28  ;;  %1671 = vmatpush.bf16.msra.mxu2 %v3028_v36 }
  0x2e   :  { %v3651_v33 = vld [vmem:[#allocation2 + $0x6e0] sm:$0xf]  ;;  %v4335_v34 = vld [vmem:[#allocation2 + $0x6ec] sm:$0xf0]  ;;  %v3524_v41 = vor.u32 %v4303_v32, %v3523_v30  ;;  %1684 = vmatpush.bf16.msra.mxu3 %v3156_v39 }
  0x2f   :  { %v3779_v37 = vld [vmem:[#allocation2 + $0x7e0] sm:$0xf]  ;;  %v4367_v38 = vld [vmem:[#allocation2 + $0x7ec] sm:$0xf0]  ;;  %v3652_v42 = vor.u32 %v4335_v34, %v3651_v33  ;;  %1690 = vmatpush.bf16.msrb.mxu0 %v3396_v40 }
  0x30   :  { %v3379_v43 = vld [vmem:[#allocation2 + $0x4c0] sm:$0xf]  ;;  %v4267_v44 = vld [vmem:[#allocation2 + $0x4cc] sm:$0xf0]  ;;  %v3780_v46 = vor.u32 %v4367_v38, %v3779_v37  ;;  %1703 = vmatpush.bf16.msrb.mxu1 %v3524_v41 }
  0x31   :  { %v3507_v45 = vld [vmem:[#allocation2 + $0x5c0] sm:$0xf]  ;;  %v4299_v47 = vld [vmem:[#allocation2 + $0x5cc] sm:$0xf0]  ;;  %v3380_v52 = vor.u32 %v4267_v44, %v3379_v43  ;;  %1716 = vmatpush.bf16.msrb.mxu2 %v3652_v42 }
  0x32   :  { %v3635_v48 = vld [vmem:[#allocation2 + $0x6c0] sm:$0xf]  ;;  %v4331_v49 = vld [vmem:[#allocation2 + $0x6cc] sm:$0xf0]  ;;  %v3508_v55 = vor.u32 %v4299_v47, %v3507_v45  ;;  %1729 = vmatpush.bf16.msrb.mxu3 %v3780_v46 }
  0x33   :  { %v3763_v50 = vld [vmem:[#allocation2 + $0x7c0] sm:$0xf]  ;;  %v4363_v51 = vld [vmem:[#allocation2 + $0x7cc] sm:$0xf0]  ;;  %v3636_v56 = vor.u32 %v4331_v49, %v3635_v48  ;;  %1691 = vmatpush.bf16.msrb.mxu0 %v3380_v52 }
  0x34   :  { %v3363_v53 = vld [vmem:[#allocation2 + $0x4a0] sm:$0xf]  ;;  %v4263_v54 = vld [vmem:[#allocation2 + $0x4ac] sm:$0xf0]  ;;  %v3764_v60 = vor.u32 %v4363_v51, %v3763_v50  ;;  %1704 = vmatpush.bf16.msrb.mxu1 %v3508_v55 }
  0x35   :  { %v3491_v57 = vld [vmem:[#allocation2 + $0x5a0] sm:$0xf]  ;;  %v4295_v58 = vld [vmem:[#allocation2 + $0x5ac] sm:$0xf0]  ;;  %v3364_v1 = vor.u32 %v4263_v54, %v3363_v53  ;;  %1717 = vmatpush.bf16.msrb.mxu2 %v3636_v56 }
  0x36   :  { %v3619_v61 = vld [vmem:[#allocation2 + $0x6a0] sm:$0xf]  ;;  %v4327_v62 = vld [vmem:[#allocation2 + $0x6ac] sm:$0xf0]  ;;  %v3492_v3 = vor.u32 %v4295_v58, %v3491_v57  ;;  %1730 = vmatpush.bf16.msrb.mxu3 %v3764_v60 }
  0x37   :  { %v3747_v63 = vld [vmem:[#allocation2 + $0x7a0] sm:$0xf]  ;;  %v4359_v0 = vld [vmem:[#allocation2 + $0x7ac] sm:$0xf0]  ;;  %v3620_v4 = vor.u32 %v4327_v62, %v3619_v61  ;;  %1692 = vmatpush.bf16.msrb.mxu0 %v3364_v1 }
  0x38   :  { %v3347_v2 = vld [vmem:[#allocation2 + $0x480] sm:$0xf]  ;;  %v4259_v5 = vld [vmem:[#allocation2 + $0x48c] sm:$0xf0]  ;;  %v3748_v8 = vor.u32 %v4359_v0, %v3747_v63  ;;  %1705 = vmatpush.bf16.msrb.mxu1 %v3492_v3 }
  0x39   :  { %v3475_v6 = vld [vmem:[#allocation2 + $0x580] sm:$0xf]  ;;  %v4291_v7 = vld [vmem:[#allocation2 + $0x58c] sm:$0xf0]  ;;  %v3348_v15 = vor.u32 %v4259_v5, %v3347_v2  ;;  %1718 = vmatpush.bf16.msrb.mxu2 %v3620_v4 }
  0x3a   :  { %v3603_v9 = vld [vmem:[#allocation2 + $0x680] sm:$0xf]  ;;  %v4323_v10 = vld [vmem:[#allocation2 + $0x68c] sm:$0xf0]  ;;  %v3476_v20 = vor.u32 %v4291_v7, %v3475_v6  ;;  %1731 = vmatpush.bf16.msrb.mxu3 %v3748_v8  ;;  %v4141_v6 = vld [vmem:[#allocation2 + $0xe4] sm:$0xf] }
  0x3b   :  { %v3731_v11 = vld [vmem:[#allocation2 + $0x780] sm:$0xf]  ;;  %v4355_v12 = vld [vmem:[#allocation2 + $0x78c] sm:$0xf0]  ;;  %v3604_v21 = vor.u32 %v4323_v10, %v3603_v9  ;;  %1693 = vmatpush.bf16.msrb.mxu0 %v3348_v15  ;;  %v2885_v7 = vld [vmem:[#allocation2 + $0xf0] sm:$0xf0] }
  0x3c   :  { %v3331_v13 = vld [vmem:[#allocation2 + $0x460] sm:$0xf]  ;;  %v4255_v14 = vld [vmem:[#allocation2 + $0x46c] sm:$0xf0]  ;;  %v3732_v24 = vor.u32 %v4355_v12, %v3731_v11  ;;  %1706 = vmatpush.bf16.msrb.mxu1 %v3476_v20  ;;  %v4173_v8 = vld [vmem:[#allocation2 + $0x1e4] sm:$0xf] }
  0x3d   :  { %v3459_v16 = vld [vmem:[#allocation2 + $0x560] sm:$0xf]  ;;  %v4287_v17 = vld [vmem:[#allocation2 + $0x56c] sm:$0xf0]  ;;  %v3332_v33 = vor.u32 %v4255_v14, %v3331_v13  ;;  %1719 = vmatpush.bf16.msrb.mxu2 %v3604_v21  ;;  %v3013_v9 = vld [vmem:[#allocation2 + $0x1f0] sm:$0xf0]  ;;  %v2888_v21 = vor.u32 %v4141_v6, %v2885_v7 }
  0x3e   :  { %v3587_v18 = vld [vmem:[#allocation2 + $0x660] sm:$0xf]  ;;  %v4319_v19 = vld [vmem:[#allocation2 + $0x66c] sm:$0xf0]  ;;  %v3460_v34 = vor.u32 %v4287_v17, %v3459_v16  ;;  %1732 = vmatpush.bf16.msrb.mxu3 %v3732_v24  ;;  %v4205_v10 = vld [vmem:[#allocation2 + $0x2e4] sm:$0xf]  ;;  %v3016_v24 = vor.u32 %v4173_v8, %v3013_v9 }
  0x3f   :  { %v70_v22 = vld.sshfl [vmem:[#allocation1 + $0x10] sm:$0xff pattern:$0x73625140]  ;;  %v68_v23 = vld.sshfl [vmem:[#allocation1] sm:$0xff pattern:$0x73625140]  ;;  %v3588_v35 = vor.u32 %v4319_v19, %v3587_v18  ;;  %1694 = vmatpush.bf16.msrb.mxu0 %v3332_v33 }
  0x40   :  { %v4574_v25 = vpack.c.bf16 %v70_v22, %v70_v22  ;;  %v4576_v26 = vpack.c.bf16 %v68_v23, %v68_v23  ;;  %v71_v27 = vld.sshfl [vmem:[#allocation1 + $0x18] sm:$0xff pattern:$0x73625140]  ;;  %v69_v28 = vld.sshfl [vmem:[#allocation1 + $0x8] sm:$0xff pattern:$0x73625140]  ;;  %1707 = vmatpush.bf16.msrb.mxu1 %v3460_v34 }
  0x41   :  { %v3715_v29 = vld [vmem:[#allocation2 + $0x760] sm:$0xf]  ;;  %v4351_v30 = vld [vmem:[#allocation2 + $0x76c] sm:$0xf0]  ;;  %v4578_v31 = vpack.c.bf16 %v71_v27, %v71_v27  ;;  %v4580_v32 = vpack.c.bf16 %v69_v28, %v69_v28  ;;  %1720 = vmatpush.bf16.msrb.mxu2 %v3588_v35  ;;  %v3141_v12 = vld [vmem:[#allocation2 + $0x2f0] sm:$0xf0] }
  0x42   :  { %1672 = vmatmul.bf16.vlgmr.msra.gmra.mxu2 %v4574_v25  ;;  %v3315_v36 = vld [vmem:[#allocation2 + $0x440] sm:$0xf]  ;;  %v4251_v37 = vld [vmem:[#allocation2 + $0x44c] sm:$0xf0]  ;;  %v3716_v39 = vor.u32 %v4351_v30, %v3715_v29  ;;  %1646 = vmatmul.bf16.vlgmr.msra.gmra.mxu0 %v4576_v26  ;;  %v4237_v13 = vld [vmem:[#allocation2 + $0x3e4] sm:$0xf]  ;;  %v3144_v27 = vor.u32 %v4205_v10, %v3141_v12 }
  0x43   :  { %v3443_v38 = vld [vmem:[#allocation2 + $0x540] sm:$0xf]  ;;  %v4283_v40 = vld [vmem:[#allocation2 + $0x54c] sm:$0xf0]  ;;  %1685 = vmatmul.bf16.vlgmr.msra.gmra.mxu3 %v4578_v31  ;;  %1659 = vmatmul.bf16.vlgmr.msra.gmra.mxu1 %v4580_v32  ;;  %v3316_v45 = vor.u32 %v4251_v37, %v3315_v36  ;;  %v3269_v14 = vld [vmem:[#allocation2 + $0x3f0] sm:$0xf0] }
  0x44   :  { %v3571_v41 = vld [vmem:[#allocation2 + $0x640] sm:$0xf]  ;;  %v4315_v42 = vld [vmem:[#allocation2 + $0x64c] sm:$0xf0]  ;;  %v3444_v48 = vor.u32 %v4283_v40, %v3443_v38  ;;  %1733 = vmatpush.bf16.msrb.mxu3 %v3716_v39  ;;  %v4137_v17 = vld [vmem:[#allocation2 + $0xc4] sm:$0xf]  ;;  %v3272_v30 = vor.u32 %v4237_v13, %v3269_v14 }
  0x45   :  { %v3699_v43 = vld [vmem:[#allocation2 + $0x740] sm:$0xf]  ;;  %v4347_v44 = vld [vmem:[#allocation2 + $0x74c] sm:$0xf0]  ;;  %v3572_v49 = vor.u32 %v4315_v42, %v3571_v41  ;;  %1695 = vmatpush.bf16.msrb.mxu0 %v3316_v45  ;;  %v2869_v18 = vld [vmem:[#allocation2 + $0xd0] sm:$0xf0] }
  0x46   :  { %v3299_v46 = vld [vmem:[#allocation2 + $0x420] sm:$0xf]  ;;  %v4247_v47 = vld [vmem:[#allocation2 + $0x42c] sm:$0xf0]  ;;  %v3700_v53 = vor.u32 %v4347_v44, %v3699_v43  ;;  %1708 = vmatpush.bf16.msrb.mxu1 %v3444_v48  ;;  %v4169_v28 = vld [vmem:[#allocation2 + $0x1c4] sm:$0xf]  ;;  %v2872_v41 = vor.u32 %v4137_v17, %v2869_v18 }
  0x47   :  { %v3427_v50 = vld [vmem:[#allocation2 + $0x520] sm:$0xf]  ;;  %v4279_v51 = vld [vmem:[#allocation2 + $0x52c] sm:$0xf0]  ;;  %v3300_v59 = vor.u32 %v4247_v47, %v3299_v46  ;;  %1721 = vmatpush.bf16.msrb.mxu2 %v3572_v49  ;;  %v2997_v33 = vld [vmem:[#allocation2 + $0x1d0] sm:$0xf0] }
  0x48   :  { %v62_v52 = vld [vmem:[%s4742_s0 + $0x8] sm:$0xff]  ;;  %v4311_v55 = vld [vmem:[#allocation2 + $0x62c] sm:$0xf0]  ;;  %v3428_v63 = vor.u32 %v4279_v51, %v3427_v50  ;;  %1734 = vmatpush.bf16.msrb.mxu3 %v3700_v53  ;;  %v3125_v35 = vld [vmem:[#allocation2 + $0x2d0] sm:$0xf0]  ;;  %v3000_v43 = vor.u32 %v4169_v28, %v2997_v33 }
  0x49   :  { %v3555_v54 = vld [vmem:[#allocation2 + $0x620] sm:$0xf]  ;;  %67 = vst [vmem:[#allocation1 + $0x20] ss:$4 sm:$0xff] %v62_v52  ;;  %v4343_v57 = vld [vmem:[#allocation2 + $0x72c] sm:$0xf0]  ;;  %1696 = vmatpush.bf16.msrb.mxu0 %v3300_v59 }
  0x4a   :  { %v3683_v56 = vld [vmem:[#allocation2 + $0x720] sm:$0xf]  ;;  %v4243_v60 = vld [vmem:[#allocation2 + $0x40c] sm:$0xf0]  ;;  %v3556_v0 = vor.u32 %v4311_v55, %v3555_v54  ;;  %1709 = vmatpush.bf16.msrb.mxu1 %v3428_v63  ;;  %v4201_v34 = vld [vmem:[#allocation2 + $0x2c4] sm:$0xf] }
  0x4b   :  { %v3283_v58 = vld [vmem:[#allocation2 + $0x400] sm:$0xf]  ;;  %v4275_v62 = vld [vmem:[#allocation2 + $0x50c] sm:$0xf0]  ;;  %v3684_v4 = vor.u32 %v4343_v57, %v3683_v56  ;;  %v4233_v37 = vld [vmem:[#allocation2 + $0x3c4] sm:$0xf]  ;;  %v3128_v44 = vor.u32 %v4201_v34, %v3125_v35 }
  0x4c   :  { %v3411_v61 = vld [vmem:[#allocation2 + $0x500] sm:$0xf]  ;;  %v4307_v2 = vld [vmem:[#allocation2 + $0x60c] sm:$0xf0]  ;;  %v3284_v11 = vor.u32 %v4243_v60, %v3283_v58  ;;  %1722 = vmatpush.bf16.msrb.mxu2 %v3556_v0  ;;  %v3253_v38 = vld [vmem:[#allocation2 + $0x3d0] sm:$0xf0] }
  0x4d   :  { %v3539_v1 = vld [vmem:[#allocation2 + $0x600] sm:$0xf]  ;;  %v4339_v5 = vld [vmem:[#allocation2 + $0x70c] sm:$0xf0]  ;;  %v3412_v15 = vor.u32 %v4275_v62, %v3411_v61  ;;  %1735 = vmatpush.bf16.msrb.mxu3 %v3684_v4  ;;  %v4133_v45 = vld [vmem:[#allocation2 + $0xa4] sm:$0xf]  ;;  %v3256_v48 = vor.u32 %v4233_v37, %v3253_v38 }
  0x4e   :  { %v3667_v3 = vld [vmem:[#allocation2 + $0x700] sm:$0xf]  ;;  %v3540_v16 = vor.u32 %v4307_v2, %v3539_v1  ;;  %1697 = vmatpush.bf16.msrb.mxu0 %v3284_v11  ;;  %v2853_v46 = vld [vmem:[#allocation2 + $0xb0] sm:$0xf0]  ;;  %v4165_v47 = vld [vmem:[#allocation2 + $0x1a4] sm:$0xf] }
  0x4f   :  { %v3668_v20 = vor.u32 %v4339_v5, %v3667_v3  ;;  %1710 = vmatpush.bf16.msrb.mxu1 %v3412_v15  ;;  %v2981_v49 = vld [vmem:[#allocation2 + $0x1b0] sm:$0xf0]  ;;  %v4197_v50 = vld [vmem:[#allocation2 + $0x2a4] sm:$0xf]  ;;  %v2856_v54 = vor.u32 %v4133_v45, %v2853_v46 }
  0x50   :  { %v74_v19 = vld.sshfl [vmem:[#allocation1 + $0x30] sm:$0xff pattern:$0x73625140]  ;;  %v72_v22 = vld.sshfl [vmem:[#allocation1 + $0x20] sm:$0xff pattern:$0x73625140]  ;;  %1723 = vmatpush.bf16.msrb.mxu2 %v3540_v16  ;;  %v2984_v55 = vor.u32 %v4165_v47, %v2981_v49 }
  0x51   :  { %v75_v23 = vld.sshfl [vmem:[#allocation1 + $0x38] sm:$0xff pattern:$0x73625140]  ;;  %v73_v29 = vld.sshfl [vmem:[#allocation1 + $0x28] sm:$0xff pattern:$0x73625140]  ;;  %v4589_v36 = vpack.c.bf16 %v74_v19, %v74_v19  ;;  %v4591_v39 = vpack.c.bf16 %v72_v22, %v72_v22  ;;  %1736 = vmatpush.bf16.msrb.mxu3 %v3668_v20 }
  0x52   :  { %v4593_v40 = vpack.c.bf16 %v75_v23, %v75_v23  ;;  %1742 = vmatpush.bf16.msra.mxu0 %v2888_v21  ;;  %v4595_v42 = vpack.c.bf16 %v73_v29, %v73_v29  ;;  %v3109_v51 = vld [vmem:[#allocation2 + $0x2b0] sm:$0xf0]  ;;  %v4229_v52 = vld [vmem:[#allocation2 + $0x3a4] sm:$0xf] }
  0x53   :  { %1755 = vmatpush.bf16.msra.mxu1 %v3016_v24  ;;  %1724 = vmatmul.bf16.vlgmr.msrb.gmra.mxu2 %v4589_v36  ;;  %v3237_v53 = vld [vmem:[#allocation2 + $0x3b0] sm:$0xf0]  ;;  %v3112_v56 = vor.u32 %v4197_v50, %v3109_v51  ;;  %v4129_v57 = vld [vmem:[#allocation2 + $0x84] sm:$0xf] }
  0x54   :  { %1768 = vmatpush.bf16.msra.mxu2 %v3144_v27  ;;  %1698 = vmatmul.bf16.vlgmr.msrb.gmra.mxu0 %v4591_v39  ;;  %v2837_v58 = vld [vmem:[#allocation2 + $0x90] sm:$0xf0]  ;;  %v4161_v59 = vld [vmem:[#allocation2 + $0x184] sm:$0xf]  ;;  %v3240_v60 = vor.u32 %v4229_v52, %v3237_v53 }
  0x55   :  { %1781 = vmatpush.bf16.msra.mxu3 %v3272_v30  ;;  %1711 = vmatmul.bf16.vlgmr.msrb.gmra.mxu1 %v4595_v42  ;;  %v2965_v61 = vld [vmem:[#allocation2 + $0x190] sm:$0xf0]  ;;  %v4193_v62 = vld [vmem:[#allocation2 + $0x284] sm:$0xf]  ;;  %v2840_v2 = vor.u32 %v4129_v57, %v2837_v58 }
  0x56   :  { %1737 = vmatmul.bf16.vlgmr.msrb.gmra.mxu3 %v4593_v40  ;;  %1743 = vmatpush.bf16.msra.mxu0 %v2872_v41  ;;  %v3093_v63 = vld [vmem:[#allocation2 + $0x290] sm:$0xf0]  ;;  %v4225_v0 = vld [vmem:[#allocation2 + $0x384] sm:$0xf]  ;;  %v2968_v3 = vor.u32 %v4161_v59, %v2965_v61 }
  0x57   :  { %1756 = vmatpush.bf16.msra.mxu1 %v3000_v43  ;;  %v3221_v1 = vld [vmem:[#allocation2 + $0x390] sm:$0xf0]  ;;  %v3096_v4 = vor.u32 %v4193_v62, %v3093_v63  ;;  %v4125_v5 = vld [vmem:[#allocation2 + $0x64] sm:$0xf] }
  0x58   :  { %1769 = vmatpush.bf16.msra.mxu2 %v3128_v44  ;;  %v2821_v6 = vld [vmem:[#allocation2 + $0x70] sm:$0xf0]  ;;  %v4157_v7 = vld [vmem:[#allocation2 + $0x164] sm:$0xf]  ;;  %v3224_v8 = vor.u32 %v4225_v0, %v3221_v1 }
  0x59   :  { %1782 = vmatpush.bf16.msra.mxu3 %v3256_v48  ;;  %v2949_v9 = vld [vmem:[#allocation2 + $0x170] sm:$0xf0]  ;;  %v4189_v10 = vld [vmem:[#allocation2 + $0x264] sm:$0xf]  ;;  %v2824_v14 = vor.u32 %v4125_v5, %v2821_v6 }
  0x5a   :  { %1744 = vmatpush.bf16.msra.mxu0 %v2856_v54  ;;  %v3077_v11 = vld [vmem:[#allocation2 + $0x270] sm:$0xf0]  ;;  %v4221_v12 = vld [vmem:[#allocation2 + $0x364] sm:$0xf]  ;;  %v2952_v15 = vor.u32 %v4157_v7, %v2949_v9 }
  0x5b   :  { %1757 = vmatpush.bf16.msra.mxu1 %v2984_v55  ;;  %v3205_v13 = vld [vmem:[#allocation2 + $0x370] sm:$0xf0]  ;;  %v3080_v16 = vor.u32 %v4189_v10, %v3077_v11  ;;  %v4121_v17 = vld [vmem:[#allocation2 + $0x44] sm:$0xf] }
  0x5c   :  { %1770 = vmatpush.bf16.msra.mxu2 %v3112_v56  ;;  %v2805_v18 = vld [vmem:[#allocation2 + $0x50] sm:$0xf0]  ;;  %v4153_v19 = vld [vmem:[#allocation2 + $0x144] sm:$0xf]  ;;  %v3208_v20 = vor.u32 %v4221_v12, %v3205_v13 }
  0x5d   :  { %1783 = vmatpush.bf16.msra.mxu3 %v3240_v60  ;;  %v2933_v21 = vld [vmem:[#allocation2 + $0x150] sm:$0xf0]  ;;  %v4185_v22 = vld [vmem:[#allocation2 + $0x244] sm:$0xf]  ;;  %v2808_v28 = vor.u32 %v4121_v17, %v2805_v18 }
  0x5e   :  { %1745 = vmatpush.bf16.msra.mxu0 %v2840_v2  ;;  %v3061_v23 = vld [vmem:[#allocation2 + $0x250] sm:$0xf0]  ;;  %v4217_v24 = vld [vmem:[#allocation2 + $0x344] sm:$0xf]  ;;  %v2936_v29 = vor.u32 %v4153_v19, %v2933_v21 }
  0x5f   :  { %1758 = vmatpush.bf16.msra.mxu1 %v2968_v3  ;;  %v3189_v27 = vld [vmem:[#allocation2 + $0x350] sm:$0xf0]  ;;  %v3064_v30 = vor.u32 %v4185_v22, %v3061_v23  ;;  %v4117_v33 = vld [vmem:[#allocation2 + $0x24] sm:$0xf] }
  0x60   :  { %1771 = vmatpush.bf16.msra.mxu2 %v3096_v4  ;;  %v2789_v34 = vld [vmem:[#allocation2 + $0x30] sm:$0xf0]  ;;  %v4149_v35 = vld [vmem:[#allocation2 + $0x124] sm:$0xf]  ;;  %v3192_v37 = vor.u32 %v4217_v24, %v3189_v27 }
  0x61   :  { %1784 = vmatpush.bf16.msra.mxu3 %v3224_v8  ;;  %v2917_v38 = vld [vmem:[#allocation2 + $0x130] sm:$0xf0]  ;;  %v4181_v41 = vld [vmem:[#allocation2 + $0x224] sm:$0xf]  ;;  %v2792_v46 = vor.u32 %v4117_v33, %v2789_v34 }
  0x62   :  { %1746 = vmatpush.bf16.msra.mxu0 %v2824_v14  ;;  %v3045_v43 = vld [vmem:[#allocation2 + $0x230] sm:$0xf0]  ;;  %v4213_v44 = vld [vmem:[#allocation2 + $0x324] sm:$0xf]  ;;  %v2920_v49 = vor.u32 %v4149_v35, %v2917_v38 }
  0x63   :  { %1759 = vmatpush.bf16.msra.mxu1 %v2952_v15  ;;  %v3173_v45 = vld [vmem:[#allocation2 + $0x330] sm:$0xf0]  ;;  %v4113_v47 = vld [vmem:[#allocation2 + $0x4] sm:$0xf]  ;;  %v3048_v50 = vor.u32 %v4181_v41, %v3045_v43 }
  0x64   :  { %1772 = vmatpush.bf16.msra.mxu2 %v3080_v16  ;;  %v2773_v48 = vld [vmem:[#allocation2 + $0x10] sm:$0xf0]  ;;  %v4145_v51 = vld [vmem:[#allocation2 + $0x104] sm:$0xf]  ;;  %v3176_v54 = vor.u32 %v4213_v44, %v3173_v45 }
  0x65   :  { %1785 = vmatpush.bf16.msra.mxu3 %v3208_v20  ;;  %v2901_v52 = vld [vmem:[#allocation2 + $0x110] sm:$0xf0]  ;;  %v4177_v53 = vld [vmem:[#allocation2 + $0x204] sm:$0xf]  ;;  %v2776_v61 = vor.u32 %v4113_v47, %v2773_v48 }
  0x66   :  { %1747 = vmatpush.bf16.msra.mxu0 %v2808_v28  ;;  %v3029_v55 = vld [vmem:[#allocation2 + $0x210] sm:$0xf0]  ;;  %v4209_v56 = vld [vmem:[#allocation2 + $0x304] sm:$0xf]  ;;  %v2904_v1 = vor.u32 %v4145_v51, %v2901_v52 }
  0x67   :  { %1760 = vmatpush.bf16.msra.mxu1 %v2936_v29  ;;  %v3157_v57 = vld [vmem:[#allocation2 + $0x310] sm:$0xf0]  ;;  %v4269_v58 = vld [vmem:[#allocation2 + $0x4e4] sm:$0xf]  ;;  %v3032_v2 = vor.u32 %v4177_v53, %v3029_v55 }
  0x68   :  { %1773 = vmatpush.bf16.msra.mxu2 %v3064_v30  ;;  %v3397_v59 = vld [vmem:[#allocation2 + $0x4f0] sm:$0xf0]  ;;  %v4301_v60 = vld [vmem:[#allocation2 + $0x5e4] sm:$0xf]  ;;  %v3160_v5 = vor.u32 %v4209_v56, %v3157_v57 }
  0x69   :  { %1786 = vmatpush.bf16.msra.mxu3 %v3192_v37  ;;  %v3525_v62 = vld [vmem:[#allocation2 + $0x5f0] sm:$0xf0]  ;;  %v4333_v63 = vld [vmem:[#allocation2 + $0x6e4] sm:$0xf]  ;;  %v3400_v6 = vor.u32 %v4269_v58, %v3397_v59 }
  0x6a   :  { %1748 = vmatpush.bf16.msra.mxu0 %v2792_v46  ;;  %v3653_v0 = vld [vmem:[#allocation2 + $0x6f0] sm:$0xf0]  ;;  %v4365_v3 = vld [vmem:[#allocation2 + $0x7e4] sm:$0xf]  ;;  %v3528_v7 = vor.u32 %v4301_v60, %v3525_v62 }
  0x6b   :  { %1761 = vmatpush.bf16.msra.mxu1 %v2920_v49  ;;  %v3781_v4 = vld [vmem:[#allocation2 + $0x7f0] sm:$0xf0]  ;;  %v3656_v8 = vor.u32 %v4333_v63, %v3653_v0  ;;  %v4265_v9 = vld [vmem:[#allocation2 + $0x4c4] sm:$0xf] }
  0x6c   :  { %1774 = vmatpush.bf16.msra.mxu2 %v3048_v50  ;;  %v3381_v10 = vld [vmem:[#allocation2 + $0x4d0] sm:$0xf0]  ;;  %v4297_v11 = vld [vmem:[#allocation2 + $0x5c4] sm:$0xf]  ;;  %v3784_v12 = vor.u32 %v4365_v3, %v3781_v4 }
  0x6d   :  { %1787 = vmatpush.bf16.msra.mxu3 %v3176_v54  ;;  %v3509_v13 = vld [vmem:[#allocation2 + $0x5d0] sm:$0xf0]  ;;  %v4329_v14 = vld [vmem:[#allocation2 + $0x6c4] sm:$0xf]  ;;  %v3384_v18 = vor.u32 %v4265_v9, %v3381_v10 }
  0x6e   :  { %1749 = vmatpush.bf16.msra.mxu0 %v2776_v61  ;;  %v3637_v15 = vld [vmem:[#allocation2 + $0x6d0] sm:$0xf0]  ;;  %v4361_v16 = vld [vmem:[#allocation2 + $0x7c4] sm:$0xf]  ;;  %v3512_v19 = vor.u32 %v4297_v11, %v3509_v13 }
  0x6f   :  { %1762 = vmatpush.bf16.msra.mxu1 %v2904_v1  ;;  %v3765_v17 = vld [vmem:[#allocation2 + $0x7d0] sm:$0xf0]  ;;  %v3640_v20 = vor.u32 %v4329_v14, %v3637_v15  ;;  %v4261_v21 = vld [vmem:[#allocation2 + $0x4a4] sm:$0xf] }
  0x70   :  { %1775 = vmatpush.bf16.msra.mxu2 %v3032_v2  ;;  %v3365_v22 = vld [vmem:[#allocation2 + $0x4b0] sm:$0xf0]  ;;  %v4293_v23 = vld [vmem:[#allocation2 + $0x5a4] sm:$0xf]  ;;  %v3768_v24 = vor.u32 %v4361_v16, %v3765_v17 }
  0x71   :  { %1788 = vmatpush.bf16.msra.mxu3 %v3160_v5  ;;  %v3493_v27 = vld [vmem:[#allocation2 + $0x5b0] sm:$0xf0]  ;;  %v4325_v28 = vld [vmem:[#allocation2 + $0x6a4] sm:$0xf]  ;;  %1750 = vmatmul.bf16.vlgmr.msra.gmra.mxu0 %v4576_v26  ;;  %v3368_v34 = vor.u32 %v4261_v21, %v3365_v22 }
  0x72   :  { %1794 = vmatpush.bf16.msrb.mxu0 %v3400_v6  ;;  %v3621_v29 = vld [vmem:[#allocation2 + $0x6b0] sm:$0xf0]  ;;  %v4357_v30 = vld [vmem:[#allocation2 + $0x7a4] sm:$0xf]  ;;  %1763 = vmatmul.bf16.vlgmr.msra.gmra.mxu1 %v4580_v32  ;;  %v3496_v35 = vor.u32 %v4293_v23, %v3493_v27 }
  0x73   :  { %1807 = vmatpush.bf16.msrb.mxu1 %v3528_v7  ;;  %1776 = vmatmul.bf16.vlgmr.msra.gmra.mxu2 %v4574_v25  ;;  %v3749_v33 = vld [vmem:[#allocation2 + $0x7b0] sm:$0xf0]  ;;  %v3624_v37 = vor.u32 %v4325_v28, %v3621_v29  ;;  %v4257_v38 = vld [vmem:[#allocation2 + $0x484] sm:$0xf] }
  0x74   :  { %1820 = vmatpush.bf16.msrb.mxu2 %v3656_v8  ;;  %1789 = vmatmul.bf16.vlgmr.msra.gmra.mxu3 %v4578_v31  ;;  %v3349_v41 = vld [vmem:[#allocation2 + $0x490] sm:$0xf0]  ;;  %v4289_v43 = vld [vmem:[#allocation2 + $0x584] sm:$0xf]  ;;  %v3752_v44 = vor.u32 %v4357_v30, %v3749_v33 }
  0x75   :  { %1833 = vmatpush.bf16.msrb.mxu3 %v3784_v12  ;;  %v3477_v45 = vld [vmem:[#allocation2 + $0x590] sm:$0xf0]  ;;  %v4321_v46 = vld [vmem:[#allocation2 + $0x684] sm:$0xf]  ;;  %v3352_v50 = vor.u32 %v4257_v38, %v3349_v41  ;;  %v2891_v41 = vld [vmem:[#allocation2 + $0xe8] sm:$0xf] }
  0x76   :  { %1795 = vmatpush.bf16.msrb.mxu0 %v3384_v18  ;;  %v3605_v47 = vld [vmem:[#allocation2 + $0x690] sm:$0xf0]  ;;  %v4353_v48 = vld [vmem:[#allocation2 + $0x784] sm:$0xf]  ;;  %v3480_v51 = vor.u32 %v4289_v43, %v3477_v45  ;;  %v4144_v43 = vld [vmem:[#allocation2 + $0xf4] sm:$0xf0] }
  0x77   :  { %1808 = vmatpush.bf16.msrb.mxu1 %v3512_v19  ;;  %v3733_v49 = vld [vmem:[#allocation2 + $0x790] sm:$0xf0]  ;;  %v3608_v52 = vor.u32 %v4321_v46, %v3605_v47  ;;  %v4253_v53 = vld [vmem:[#allocation2 + $0x464] sm:$0xf]  ;;  %v4176_v46 = vld [vmem:[#allocation2 + $0x1f4] sm:$0xf0] }
  0x78   :  { %1821 = vmatpush.bf16.msrb.mxu2 %v3640_v20  ;;  %v3333_v54 = vld [vmem:[#allocation2 + $0x470] sm:$0xf0]  ;;  %v4285_v55 = vld [vmem:[#allocation2 + $0x564] sm:$0xf]  ;;  %v3736_v56 = vor.u32 %v4353_v48, %v3733_v49  ;;  %v3147_v47 = vld [vmem:[#allocation2 + $0x2e8] sm:$0xf] }
  0x79   :  { %1834 = vmatpush.bf16.msrb.mxu3 %v3768_v24  ;;  %v3461_v57 = vld [vmem:[#allocation2 + $0x570] sm:$0xf0]  ;;  %v4317_v58 = vld [vmem:[#allocation2 + $0x664] sm:$0xf]  ;;  %v3336_v62 = vor.u32 %v4253_v53, %v3333_v54  ;;  %v4208_v48 = vld [vmem:[#allocation2 + $0x2f4] sm:$0xf0]  ;;  %v2892_v54 = vor.u32 %v4144_v43, %v2891_v41 }
  0x7a   :  { %1796 = vmatpush.bf16.msrb.mxu0 %v3368_v34  ;;  %v3589_v59 = vld [vmem:[#allocation2 + $0x670] sm:$0xf0]  ;;  %v4349_v60 = vld [vmem:[#allocation2 + $0x764] sm:$0xf]  ;;  %v3464_v63 = vor.u32 %v4285_v55, %v3461_v57  ;;  %v2875_v57 = vld [vmem:[#allocation2 + $0xc8] sm:$0xf] }
  0x7b   :  { %1809 = vmatpush.bf16.msrb.mxu1 %v3496_v35  ;;  %v3717_v61 = vld [vmem:[#allocation2 + $0x770] sm:$0xf0]  ;;  %v3592_v0 = vor.u32 %v4317_v58, %v3589_v59  ;;  %v4249_v1 = vld [vmem:[#allocation2 + $0x444] sm:$0xf]  ;;  %v4140_v58 = vld [vmem:[#allocation2 + $0xd4] sm:$0xf0] }
  0x7c   :  { %1822 = vmatpush.bf16.msrb.mxu2 %v3624_v37  ;;  %v3317_v2 = vld [vmem:[#allocation2 + $0x450] sm:$0xf0]  ;;  %v4281_v3 = vld [vmem:[#allocation2 + $0x544] sm:$0xf]  ;;  %v3720_v4 = vor.u32 %v4349_v60, %v3717_v61  ;;  %v3003_v59 = vld [vmem:[#allocation2 + $0x1c8] sm:$0xf] }
  0x7d   :  { %1835 = vmatpush.bf16.msrb.mxu3 %v3752_v44  ;;  %v3445_v5 = vld [vmem:[#allocation2 + $0x550] sm:$0xf0]  ;;  %v4313_v6 = vld [vmem:[#allocation2 + $0x644] sm:$0xf]  ;;  %v3320_v10 = vor.u32 %v4249_v1, %v3317_v2  ;;  %v3019_v44 = vld [vmem:[#allocation2 + $0x1e8] sm:$0xf]  ;;  %v2876_v2 = vor.u32 %v4140_v58, %v2875_v57 }
  0x7e   :  { %1797 = vmatpush.bf16.msrb.mxu0 %v3352_v50  ;;  %v3573_v7 = vld [vmem:[#allocation2 + $0x650] sm:$0xf0]  ;;  %v4345_v8 = vld [vmem:[#allocation2 + $0x744] sm:$0xf]  ;;  %v3448_v11 = vor.u32 %v4281_v3, %v3445_v5  ;;  %v3020_v55 = vor.u32 %v4176_v46, %v3019_v44  ;;  %v4172_v61 = vld [vmem:[#allocation2 + $0x1d4] sm:$0xf0] }
  0x7f   :  { %1810 = vmatpush.bf16.msrb.mxu1 %v3480_v51  ;;  %v3701_v9 = vld [vmem:[#allocation2 + $0x750] sm:$0xf0]  ;;  %v3576_v12 = vor.u32 %v4313_v6, %v3573_v7  ;;  %v4245_v13 = vld [vmem:[#allocation2 + $0x424] sm:$0xf]  ;;  %v3275_v51 = vld [vmem:[#allocation2 + $0x3e8] sm:$0xf]  ;;  %v3004_v3 = vor.u32 %v4172_v61, %v3003_v59 }
  0x80   :  { %1823 = vmatpush.bf16.msrb.mxu2 %v3608_v52  ;;  %v3301_v14 = vld [vmem:[#allocation2 + $0x430] sm:$0xf0]  ;;  %v4277_v15 = vld [vmem:[#allocation2 + $0x524] sm:$0xf]  ;;  %v3704_v16 = vor.u32 %v4345_v8, %v3701_v9  ;;  %v4240_v52 = vld [vmem:[#allocation2 + $0x3f4] sm:$0xf0] }
  0x81   :  { %1836 = vmatpush.bf16.msrb.mxu3 %v3736_v56  ;;  %v3429_v17 = vld [vmem:[#allocation2 + $0x530] sm:$0xf0]  ;;  %v4309_v18 = vld [vmem:[#allocation2 + $0x624] sm:$0xf]  ;;  %v3304_v22 = vor.u32 %v4245_v13, %v3301_v14  ;;  %v3148_v56 = vor.u32 %v4208_v48, %v3147_v47  ;;  %v3276_v60 = vor.u32 %v4240_v52, %v3275_v51  ;;  %v4236_v1 = vld [vmem:[#allocation2 + $0x3d4] sm:$0xf0] }
  0x82   :  { %1798 = vmatpush.bf16.msrb.mxu0 %v3336_v62  ;;  %v3557_v19 = vld [vmem:[#allocation2 + $0x630] sm:$0xf0]  ;;  %v4341_v20 = vld [vmem:[#allocation2 + $0x724] sm:$0xf]  ;;  %v3432_v27 = vor.u32 %v4277_v15, %v3429_v17  ;;  %v3131_v62 = vld [vmem:[#allocation2 + $0x2c8] sm:$0xf] }
  0x83   :  { %1811 = vmatpush.bf16.msrb.mxu1 %v3464_v63  ;;  %v3685_v21 = vld [vmem:[#allocation2 + $0x730] sm:$0xf0]  ;;  %v4241_v23 = vld [vmem:[#allocation2 + $0x404] sm:$0xf]  ;;  %v3560_v28 = vor.u32 %v4309_v18, %v3557_v19  ;;  %v4204_v63 = vld [vmem:[#allocation2 + $0x2d4] sm:$0xf0] }
  0x84   :  { %1824 = vmatpush.bf16.msrb.mxu2 %v3592_v0  ;;  %v3285_v24 = vld [vmem:[#allocation2 + $0x410] sm:$0xf0]  ;;  %v4273_v29 = vld [vmem:[#allocation2 + $0x504] sm:$0xf]  ;;  %v3688_v34 = vor.u32 %v4341_v20, %v3685_v21  ;;  %v3259_v0 = vld [vmem:[#allocation2 + $0x3c8] sm:$0xf] }
  0x85   :  { %1837 = vmatpush.bf16.msrb.mxu3 %v3720_v4  ;;  %v3413_v30 = vld [vmem:[#allocation2 + $0x510] sm:$0xf0]  ;;  %v4305_v33 = vld [vmem:[#allocation2 + $0x604] sm:$0xf]  ;;  %v3288_v45 = vor.u32 %v4241_v23, %v3285_v24  ;;  %v3132_v4 = vor.u32 %v4204_v63, %v3131_v62  ;;  %v2859_v5 = vld [vmem:[#allocation2 + $0xa8] sm:$0xf]  ;;  %v3260_v8 = vor.u32 %v4236_v1, %v3259_v0 }
  0x86   :  { %1799 = vmatpush.bf16.msrb.mxu0 %v3320_v10  ;;  %v3541_v35 = vld [vmem:[#allocation2 + $0x610] sm:$0xf0]  ;;  %v4337_v37 = vld [vmem:[#allocation2 + $0x704] sm:$0xf]  ;;  %v3416_v49 = vor.u32 %v4273_v29, %v3413_v30  ;;  %v4136_v6 = vld [vmem:[#allocation2 + $0xb4] sm:$0xf0] }
  0x87   :  { %1812 = vmatpush.bf16.msrb.mxu1 %v3448_v11  ;;  %v3669_v38 = vld [vmem:[#allocation2 + $0x710] sm:$0xf0]  ;;  %v3544_v50 = vor.u32 %v4305_v33, %v3541_v35  ;;  %v2987_v7 = vld [vmem:[#allocation2 + $0x1a8] sm:$0xf]  ;;  %v4168_v9 = vld [vmem:[#allocation2 + $0x1b4] sm:$0xf0]  ;;  %v2860_v14 = vor.u32 %v4136_v6, %v2859_v5 }
  0x88   :  { %1825 = vmatpush.bf16.msrb.mxu2 %v3576_v12  ;;  %v3672_v53 = vor.u32 %v4337_v37, %v3669_v38  ;;  %v3115_v10 = vld [vmem:[#allocation2 + $0x2a8] sm:$0xf]  ;;  %v4200_v11 = vld [vmem:[#allocation2 + $0x2b4] sm:$0xf0]  ;;  %v2988_v15 = vor.u32 %v4168_v9, %v2987_v7 }
  0x89   :  { %1838 = vmatpush.bf16.msrb.mxu3 %v3704_v16  ;;  %v3243_v12 = vld [vmem:[#allocation2 + $0x3a8] sm:$0xf]  ;;  %v4232_v13 = vld [vmem:[#allocation2 + $0x3b4] sm:$0xf0]  ;;  %v3116_v16 = vor.u32 %v4200_v11, %v3115_v10 }
  0x8a   :  { %1800 = vmatpush.bf16.msrb.mxu0 %v3304_v22  ;;  %v2843_v17 = vld [vmem:[#allocation2 + $0x88] sm:$0xf]  ;;  %v4132_v18 = vld [vmem:[#allocation2 + $0x94] sm:$0xf0]  ;;  %v3244_v20 = vor.u32 %v4232_v13, %v3243_v12 }
  0x8b   :  { %1813 = vmatpush.bf16.msrb.mxu1 %v3432_v27  ;;  %v2971_v19 = vld [vmem:[#allocation2 + $0x188] sm:$0xf]  ;;  %v4164_v21 = vld [vmem:[#allocation2 + $0x194] sm:$0xf0] }
  0x8c   :  { %1826 = vmatpush.bf16.msrb.mxu2 %v3560_v28  ;;  %v3099_v22 = vld [vmem:[#allocation2 + $0x288] sm:$0xf]  ;;  %v4196_v23 = vld [vmem:[#allocation2 + $0x294] sm:$0xf0]  ;;  %v2844_v28 = vor.u32 %v4132_v18, %v2843_v17  ;;  %v2972_v29 = vor.u32 %v4164_v21, %v2971_v19 }
  0x8d   :  { %1839 = vmatpush.bf16.msrb.mxu3 %v3688_v34  ;;  %v3227_v24 = vld [vmem:[#allocation2 + $0x388] sm:$0xf]  ;;  %v4228_v27 = vld [vmem:[#allocation2 + $0x394] sm:$0xf0]  ;;  %v3100_v30 = vor.u32 %v4196_v23, %v3099_v22 }
  0x8e   :  { %1801 = vmatpush.bf16.msrb.mxu0 %v3288_v45  ;;  %v2827_v33 = vld [vmem:[#allocation2 + $0x68] sm:$0xf]  ;;  %v4128_v34 = vld [vmem:[#allocation2 + $0x74] sm:$0xf0]  ;;  %v3228_v37 = vor.u32 %v4228_v27, %v3227_v24 }
  0x8f   :  { %1814 = vmatpush.bf16.msrb.mxu1 %v3416_v49  ;;  %v2955_v35 = vld [vmem:[#allocation2 + $0x168] sm:$0xf]  ;;  %v4160_v38 = vld [vmem:[#allocation2 + $0x174] sm:$0xf0]  ;;  %v2828_v46 = vor.u32 %v4128_v34, %v2827_v33 }
  0x90   :  { %1827 = vmatpush.bf16.msrb.mxu2 %v3544_v50  ;;  %v3083_v41 = vld [vmem:[#allocation2 + $0x268] sm:$0xf]  ;;  %v4192_v43 = vld [vmem:[#allocation2 + $0x274] sm:$0xf0]  ;;  %v2956_v47 = vor.u32 %v4160_v38, %v2955_v35 }
  0x91   :  { %1840 = vmatpush.bf16.msrb.mxu3 %v3672_v53  ;;  %1802 = vmatmul.bf16.vlgmr.msrb.gmra.mxu0 %v4591_v39  ;;  %v3211_v44 = vld [vmem:[#allocation2 + $0x368] sm:$0xf]  ;;  %v4224_v45 = vld [vmem:[#allocation2 + $0x374] sm:$0xf0]  ;;  %v3084_v48 = vor.u32 %v4192_v43, %v3083_v41 }
  0x92   :  { %1846 = vmatpush.bf16.msra.mxu0 %v2892_v54  ;;  %1815 = vmatmul.bf16.vlgmr.msrb.gmra.mxu1 %v4595_v42  ;;  %v2811_v49 = vld [vmem:[#allocation2 + $0x48] sm:$0xf]  ;;  %v4124_v50 = vld [vmem:[#allocation2 + $0x54] sm:$0xf0]  ;;  %v3212_v52 = vor.u32 %v4224_v45, %v3211_v44 }
  0x93   :  { %1859 = vmatpush.bf16.msra.mxu1 %v3020_v55  ;;  %1828 = vmatmul.bf16.vlgmr.msrb.gmra.mxu2 %v4589_v36  ;;  %v2939_v51 = vld [vmem:[#allocation2 + $0x148] sm:$0xf]  ;;  %v4156_v53 = vld [vmem:[#allocation2 + $0x154] sm:$0xf0]  ;;  %v2812_v58 = vor.u32 %v4124_v50, %v2811_v49 }
  0x94   :  { %1872 = vmatpush.bf16.msra.mxu2 %v3148_v56  ;;  %1841 = vmatmul.bf16.vlgmr.msrb.gmra.mxu3 %v4593_v40  ;;  %v3067_v54 = vld [vmem:[#allocation2 + $0x248] sm:$0xf]  ;;  %v4188_v55 = vld [vmem:[#allocation2 + $0x254] sm:$0xf0]  ;;  %v2940_v59 = vor.u32 %v4156_v53, %v2939_v51 }
  0x95   :  { %1885 = vmatpush.bf16.msra.mxu3 %v3276_v60  ;;  %v3195_v56 = vld [vmem:[#allocation2 + $0x348] sm:$0xf]  ;;  %v4220_v57 = vld [vmem:[#allocation2 + $0x354] sm:$0xf0]  ;;  %v3068_v60 = vor.u32 %v4188_v55, %v3067_v54 }
  0x96   :  { %1847 = vmatpush.bf16.msra.mxu0 %v2876_v2  ;;  %v2795_v61 = vld [vmem:[#allocation2 + $0x28] sm:$0xf]  ;;  %v4120_v62 = vld [vmem:[#allocation2 + $0x34] sm:$0xf0]  ;;  %v3196_v0 = vor.u32 %v4220_v57, %v3195_v56 }
  0x97   :  { %1860 = vmatpush.bf16.msra.mxu1 %v3004_v3  ;;  %v2923_v63 = vld [vmem:[#allocation2 + $0x128] sm:$0xf]  ;;  %v4152_v1 = vld [vmem:[#allocation2 + $0x134] sm:$0xf0]  ;;  %v2796_v6 = vor.u32 %v4120_v62, %v2795_v61 }
  0x98   :  { %1873 = vmatpush.bf16.msra.mxu2 %v3132_v4  ;;  %v3051_v2 = vld [vmem:[#allocation2 + $0x228] sm:$0xf]  ;;  %v4184_v3 = vld [vmem:[#allocation2 + $0x234] sm:$0xf0]  ;;  %v2924_v9 = vor.u32 %v4152_v1, %v2923_v63 }
  0x99   :  { %1886 = vmatpush.bf16.msra.mxu3 %v3260_v8  ;;  %v3179_v4 = vld [vmem:[#allocation2 + $0x328] sm:$0xf]  ;;  %v4216_v5 = vld [vmem:[#allocation2 + $0x334] sm:$0xf0]  ;;  %v3052_v10 = vor.u32 %v4184_v3, %v3051_v2 }
  0x9a   :  { %1848 = vmatpush.bf16.msra.mxu0 %v2860_v14  ;;  %v2779_v7 = vld [vmem:[#allocation2 + $0x8] sm:$0xf]  ;;  %v4116_v8 = vld [vmem:[#allocation2 + $0x14] sm:$0xf0]  ;;  %v3180_v14 = vor.u32 %v4216_v5, %v3179_v4 }
  0x9b   :  { %1861 = vmatpush.bf16.msra.mxu1 %v2988_v15  ;;  %v2907_v11 = vld [vmem:[#allocation2 + $0x108] sm:$0xf]  ;;  %v4148_v12 = vld [vmem:[#allocation2 + $0x114] sm:$0xf0]  ;;  %v2780_v21 = vor.u32 %v4116_v8, %v2779_v7 }
  0x9c   :  { %1874 = vmatpush.bf16.msra.mxu2 %v3116_v16  ;;  %v3035_v13 = vld [vmem:[#allocation2 + $0x208] sm:$0xf]  ;;  %v4180_v15 = vld [vmem:[#allocation2 + $0x214] sm:$0xf0]  ;;  %v2908_v27 = vor.u32 %v4148_v12, %v2907_v11 }
  0x9d   :  { %1887 = vmatpush.bf16.msra.mxu3 %v3244_v20  ;;  %v3163_v16 = vld [vmem:[#allocation2 + $0x308] sm:$0xf]  ;;  %v4212_v17 = vld [vmem:[#allocation2 + $0x314] sm:$0xf0] }
  0x9e   :  { %1849 = vmatpush.bf16.msra.mxu0 %v2844_v28  ;;  %v3403_v18 = vld [vmem:[#allocation2 + $0x4e8] sm:$0xf]  ;;  %v4272_v19 = vld [vmem:[#allocation2 + $0x4f4] sm:$0xf0]  ;;  %v3036_v28 = vor.u32 %v4180_v15, %v3035_v13  ;;  %v3164_v33 = vor.u32 %v4212_v17, %v3163_v16 }
  0x9f   :  { %1862 = vmatpush.bf16.msra.mxu1 %v2972_v29  ;;  %v3531_v20 = vld [vmem:[#allocation2 + $0x5e8] sm:$0xf]  ;;  %v4304_v22 = vld [vmem:[#allocation2 + $0x5f4] sm:$0xf0]  ;;  %v3404_v34 = vor.u32 %v4272_v19, %v3403_v18 }
  0xa0   :  { %1875 = vmatpush.bf16.msra.mxu2 %v3100_v30  ;;  %v3659_v23 = vld [vmem:[#allocation2 + $0x6e8] sm:$0xf]  ;;  %v4336_v24 = vld [vmem:[#allocation2 + $0x6f4] sm:$0xf0]  ;;  %v3532_v35 = vor.u32 %v4304_v22, %v3531_v20 }
  0xa1   :  { %1888 = vmatpush.bf16.msra.mxu3 %v3228_v37  ;;  %v3787_v29 = vld [vmem:[#allocation2 + $0x7e8] sm:$0xf]  ;;  %v4368_v30 = vld [vmem:[#allocation2 + $0x7f4] sm:$0xf0]  ;;  %v3660_v37 = vor.u32 %v4336_v24, %v3659_v23 }
  0xa2   :  { %1850 = vmatpush.bf16.msra.mxu0 %v2828_v46  ;;  %v3387_v38 = vld [vmem:[#allocation2 + $0x4c8] sm:$0xf]  ;;  %v4268_v41 = vld [vmem:[#allocation2 + $0x4d4] sm:$0xf0]  ;;  %v3788_v44 = vor.u32 %v4368_v30, %v3787_v29 }
  0xa3   :  { %1863 = vmatpush.bf16.msra.mxu1 %v2956_v47  ;;  %v3515_v43 = vld [vmem:[#allocation2 + $0x5c8] sm:$0xf]  ;;  %v4300_v45 = vld [vmem:[#allocation2 + $0x5d4] sm:$0xf0]  ;;  %v3388_v50 = vor.u32 %v4268_v41, %v3387_v38 }
  0xa4   :  { %1876 = vmatpush.bf16.msra.mxu2 %v3084_v48  ;;  %v3643_v46 = vld [vmem:[#allocation2 + $0x6c8] sm:$0xf]  ;;  %v4332_v47 = vld [vmem:[#allocation2 + $0x6d4] sm:$0xf0]  ;;  %v3516_v51 = vor.u32 %v4300_v45, %v3515_v43 }
  0xa5   :  { %1889 = vmatpush.bf16.msra.mxu3 %v3212_v52  ;;  %v3771_v48 = vld [vmem:[#allocation2 + $0x7c8] sm:$0xf]  ;;  %v4364_v49 = vld [vmem:[#allocation2 + $0x7d4] sm:$0xf0]  ;;  %v3644_v52 = vor.u32 %v4332_v47, %v3643_v46 }
  0xa6   :  { %1851 = vmatpush.bf16.msra.mxu0 %v2812_v58  ;;  %v3371_v53 = vld [vmem:[#allocation2 + $0x4a8] sm:$0xf]  ;;  %v4264_v54 = vld [vmem:[#allocation2 + $0x4b4] sm:$0xf0]  ;;  %v3772_v56 = vor.u32 %v4364_v49, %v3771_v48 }
  0xa7   :  { %1864 = vmatpush.bf16.msra.mxu1 %v2940_v59  ;;  %v3499_v55 = vld [vmem:[#allocation2 + $0x5a8] sm:$0xf]  ;;  %v4296_v57 = vld [vmem:[#allocation2 + $0x5b4] sm:$0xf0]  ;;  %v3372_v62 = vor.u32 %v4264_v54, %v3371_v53 }
  0xa8   :  { %1877 = vmatpush.bf16.msra.mxu2 %v3068_v60  ;;  %v3627_v58 = vld [vmem:[#allocation2 + $0x6a8] sm:$0xf]  ;;  %v4328_v59 = vld [vmem:[#allocation2 + $0x6b4] sm:$0xf0]  ;;  %v3500_v63 = vor.u32 %v4296_v57, %v3499_v55 }
  0xa9   :  { %1890 = vmatpush.bf16.msra.mxu3 %v3196_v0  ;;  %v3755_v60 = vld [vmem:[#allocation2 + $0x7a8] sm:$0xf]  ;;  %v4360_v61 = vld [vmem:[#allocation2 + $0x7b4] sm:$0xf0]  ;;  %v3628_v0 = vor.u32 %v4328_v59, %v3627_v58 }
  0xaa   :  { %1852 = vmatpush.bf16.msra.mxu0 %v2796_v6  ;;  %v3355_v1 = vld [vmem:[#allocation2 + $0x488] sm:$0xf]  ;;  %v4260_v2 = vld [vmem:[#allocation2 + $0x494] sm:$0xf0]  ;;  %v3756_v4 = vor.u32 %v4360_v61, %v3755_v60 }
  0xab   :  { %1865 = vmatpush.bf16.msra.mxu1 %v2924_v9  ;;  %v3483_v3 = vld [vmem:[#allocation2 + $0x588] sm:$0xf]  ;;  %v4292_v5 = vld [vmem:[#allocation2 + $0x594] sm:$0xf0] }
  0xac   :  { %1878 = vmatpush.bf16.msra.mxu2 %v3052_v10  ;;  %v3611_v6 = vld [vmem:[#allocation2 + $0x688] sm:$0xf]  ;;  %v4324_v7 = vld [vmem:[#allocation2 + $0x694] sm:$0xf0]  ;;  %v3356_v10 = vor.u32 %v4260_v2, %v3355_v1  ;;  %v3484_v11 = vor.u32 %v4292_v5, %v3483_v3 }
  0xad   :  { %1891 = vmatpush.bf16.msra.mxu3 %v3180_v14  ;;  %v3739_v8 = vld [vmem:[#allocation2 + $0x788] sm:$0xf]  ;;  %v4356_v9 = vld [vmem:[#allocation2 + $0x794] sm:$0xf0]  ;;  %v3612_v12 = vor.u32 %v4324_v7, %v3611_v6 }
  0xae   :  { %1853 = vmatpush.bf16.msra.mxu0 %v2780_v21  ;;  %v3339_v13 = vld [vmem:[#allocation2 + $0x468] sm:$0xf]  ;;  %v4256_v14 = vld [vmem:[#allocation2 + $0x474] sm:$0xf0]  ;;  %v3740_v16 = vor.u32 %v4356_v9, %v3739_v8  ;;  %v4142_v8 = vld [vmem:[#allocation2 + $0xec] sm:$0xf] }
  0xaf   :  { %1866 = vmatpush.bf16.msra.mxu1 %v2908_v27  ;;  %v3467_v15 = vld [vmem:[#allocation2 + $0x568] sm:$0xf]  ;;  %v4288_v17 = vld [vmem:[#allocation2 + $0x574] sm:$0xf0]  ;;  %v3340_v22 = vor.u32 %v4256_v14, %v3339_v13  ;;  %v2893_v9 = vld [vmem:[#allocation2 + $0xf8] sm:$0xf0] }
  0xb0   :  { %1879 = vmatpush.bf16.msra.mxu2 %v3036_v28  ;;  %v3595_v18 = vld [vmem:[#allocation2 + $0x668] sm:$0xf]  ;;  %v4320_v19 = vld [vmem:[#allocation2 + $0x674] sm:$0xf0]  ;;  %v3468_v24 = vor.u32 %v4288_v17, %v3467_v15  ;;  %v3021_v13 = vld [vmem:[#allocation2 + $0x1f8] sm:$0xf0] }
  0xb1   :  { %1892 = vmatpush.bf16.msra.mxu3 %v3164_v33  ;;  %1854 = vmatmul.bf16.vlgmr.msra.gmra.mxu0 %v4576_v26  ;;  %v3723_v20 = vld [vmem:[#allocation2 + $0x768] sm:$0xf]  ;;  %v4352_v21 = vld [vmem:[#allocation2 + $0x774] sm:$0xf0]  ;;  %v3596_v27 = vor.u32 %v4320_v19, %v3595_v18  ;;  %v4206_v14 = vld [vmem:[#allocation2 + $0x2ec] sm:$0xf] }
  0xb2   :  { %1898 = vmatpush.bf16.msrb.mxu0 %v3404_v34  ;;  %1867 = vmatmul.bf16.vlgmr.msra.gmra.mxu1 %v4580_v32  ;;  %v3323_v23 = vld [vmem:[#allocation2 + $0x448] sm:$0xf]  ;;  %v4252_v28 = vld [vmem:[#allocation2 + $0x454] sm:$0xf0]  ;;  %v3724_v33 = vor.u32 %v4352_v21, %v3723_v20  ;;  %v3149_v15 = vld [vmem:[#allocation2 + $0x2f8] sm:$0xf0] }
  0xb3   :  { %1911 = vmatpush.bf16.msrb.mxu1 %v3532_v35  ;;  %1880 = vmatmul.bf16.vlgmr.msra.gmra.mxu2 %v4574_v25  ;;  %v3451_v29 = vld [vmem:[#allocation2 + $0x548] sm:$0xf]  ;;  %v4616_v30 = vld [vmem:[%s4744_s2] sm:$0xf]  ;;  %v3324_v43 = vor.u32 %v4252_v28, %v3323_v23  ;;  %v4238_v19 = vld [vmem:[#allocation2 + $0x3ec] sm:$0xf] }
  0xb4   :  { %1924 = vmatpush.bf16.msrb.mxu2 %v3660_v37  ;;  %1893 = vmatmul.bf16.vlgmr.msra.gmra.mxu3 %v4578_v31  ;;  %v4284_v34 = vld [vmem:[#allocation2 + $0x554] sm:$0xf0]  ;;  %v3579_v35 = vld [vmem:[#allocation2 + $0x648] sm:$0xf]  ;;  %v3277_v20 = vld [vmem:[#allocation2 + $0x3f8] sm:$0xf0] }
  0xb5   :  { %1937 = vmatpush.bf16.msrb.mxu3 %v3788_v44  ;;  %v4316_v37 = vld [vmem:[#allocation2 + $0x654] sm:$0xf0]  ;;  %v3707_v38 = vld [vmem:[#allocation2 + $0x748] sm:$0xf]  ;;  %v350_v44 = vperm.slane %v4616_v30, 0  ;;  %v3452_v45 = vor.u32 %v4284_v34, %v3451_v29 }
  0xb6   :  { %1899 = vmatpush.bf16.msrb.mxu0 %v3388_v50  ;;  %v4348_v41 = vld [vmem:[#allocation2 + $0x754] sm:$0xf0]  ;;  %v3580_v46 = vor.u32 %v4316_v37, %v3579_v35  ;;  %v3307_v47 = vld [vmem:[#allocation2 + $0x428] sm:$0xf]  ;;  %v4138_v28 = vld [vmem:[#allocation2 + $0xcc] sm:$0xf]  ;;  %v3280_v37 = vor.u32 %v4238_v19, %v3277_v20 }
  0xb7   :  { %1912 = vmatpush.bf16.msrb.mxu1 %v3516_v51  ;;  %v4248_v48 = vld [vmem:[#allocation2 + $0x434] sm:$0xf0]  ;;  %v3435_v49 = vld [vmem:[#allocation2 + $0x528] sm:$0xf]  ;;  %v3708_v50 = vor.u32 %v4348_v41, %v3707_v38  ;;  %v2877_v29 = vld [vmem:[#allocation2 + $0xd8] sm:$0xf0] }
  0xb8   :  { %1925 = vmatpush.bf16.msrb.mxu2 %v3644_v52  ;;  %v4280_v51 = vld [vmem:[#allocation2 + $0x534] sm:$0xf0]  ;;  %v3563_v52 = vld [vmem:[#allocation2 + $0x628] sm:$0xf]  ;;  %v3308_v57 = vor.u32 %v4248_v48, %v3307_v47  ;;  %v3005_v38 = vld [vmem:[#allocation2 + $0x1d8] sm:$0xf0]  ;;  %v2880_v47 = vor.u32 %v4138_v28, %v2877_v29 }
  0xb9   :  { %1938 = vmatpush.bf16.msrb.mxu3 %v3772_v56  ;;  %v4312_v53 = vld [vmem:[#allocation2 + $0x634] sm:$0xf0]  ;;  %v3691_v54 = vld [vmem:[#allocation2 + $0x728] sm:$0xf]  ;;  %v4202_v41 = vld [vmem:[#allocation2 + $0x2cc] sm:$0xf] }
  0xba   :  { %1900 = vmatpush.bf16.msrb.mxu0 %v3372_v62  ;;  %v4344_v55 = vld [vmem:[#allocation2 + $0x734] sm:$0xf0]  ;;  %v3291_v58 = vld [vmem:[#allocation2 + $0x408] sm:$0xf]  ;;  %v3436_v62 = vor.u32 %v4280_v51, %v3435_v49  ;;  %v2861_v51 = vld [vmem:[#allocation2 + $0xb8] sm:$0xf0] }
  0xbb   :  { %1913 = vmatpush.bf16.msrb.mxu1 %v3500_v63  ;;  %v4244_v59 = vld [vmem:[#allocation2 + $0x414] sm:$0xf0]  ;;  %v3564_v63 = vor.u32 %v4312_v53, %v3563_v52  ;;  %v3547_v2 = vld [vmem:[#allocation2 + $0x608] sm:$0xf]  ;;  %v3692_v3 = vor.u32 %v4344_v55, %v3691_v54  ;;  %v4166_v52 = vld [vmem:[#allocation2 + $0x1ac] sm:$0xf] }
  0xbc   :  { %1926 = vmatpush.bf16.msrb.mxu2 %v3628_v0  ;;  %v3419_v0 = vld [vmem:[#allocation2 + $0x508] sm:$0xf]  ;;  %v4276_v1 = vld [vmem:[#allocation2 + $0x514] sm:$0xf0]  ;;  %v2989_v55 = vld [vmem:[#allocation2 + $0x1b8] sm:$0xf0] }
  0xbd   :  { %1939 = vmatpush.bf16.msrb.mxu3 %v3756_v4  ;;  %v4308_v4 = vld [vmem:[#allocation2 + $0x614] sm:$0xf0]  ;;  %v3675_v5 = vld [vmem:[#allocation2 + $0x708] sm:$0xf]  ;;  %v3420_v17 = vor.u32 %v4276_v1, %v3419_v0  ;;  %v4130_v0 = vld [vmem:[#allocation2 + $0x8c] sm:$0xf] }
  0xbe   :  { %1901 = vmatpush.bf16.msrb.mxu0 %v3356_v10  ;;  %v4340_v6 = vld [vmem:[#allocation2 + $0x714] sm:$0xf0]  ;;  %v4174_v10 = vld [vmem:[#allocation2 + $0x1ec] sm:$0xf]  ;;  %v3548_v18 = vor.u32 %v4308_v4, %v3547_v2  ;;  %v2845_v1 = vld [vmem:[#allocation2 + $0x98] sm:$0xf0] }
  0xbf   :  { %1914 = vmatpush.bf16.msrb.mxu1 %v3484_v11  ;;  %v1647_v56 = vpop.f32.mrf.mxu0  ;;  %v3676_v21 = vor.u32 %v4340_v6, %v3675_v5  ;;  %v4162_v2 = vld [vmem:[#allocation2 + $0x18c] sm:$0xf]  ;;  %v2973_v4 = vld [vmem:[#allocation2 + $0x198] sm:$0xf0] }
  0xc0   :  { %1927 = vmatpush.bf16.msrb.mxu2 %v3612_v12  ;;  %v1648_v60 = vadd.f32 %v1647_v56, %v350_v44  ;;  %v1660_v61 = vpop.f32.mrf.mxu1  ;;  %v3292_v12 = vor.u32 %v4244_v59, %v3291_v58  ;;  %v4198_v56 = vld [vmem:[#allocation2 + $0x2ac] sm:$0xf]  ;;  %v3245_v59 = vld [vmem:[#allocation2 + $0x3b8] sm:$0xf0] }
  0xc1   :  { %1940 = vmatpush.bf16.msrb.mxu3 %v3740_v16  ;;  %v4230_v58 = vld [vmem:[#allocation2 + $0x3ac] sm:$0xf]  ;;  %v3101_v6 = vld [vmem:[#allocation2 + $0x298] sm:$0xf0] }
  0xc2   :  { %1902 = vmatpush.bf16.msrb.mxu0 %v3340_v22  ;;  %v1661_v7 = vadd.f32 %v1660_v61, %v1648_v60  ;;  %v2896_v22 = vor.u32 %v4142_v8, %v2893_v9  ;;  %v4194_v5 = vld [vmem:[#allocation2 + $0x28c] sm:$0xf]  ;;  %v3229_v8 = vld [vmem:[#allocation2 + $0x398] sm:$0xf0]  ;;  %v2848_v9 = vor.u32 %v4130_v0, %v2845_v1 }
  0xc3   :  { %1915 = vmatpush.bf16.msrb.mxu1 %v3468_v24  ;;  %v3024_v24 = vor.u32 %v4174_v10, %v3021_v13  ;;  %v4126_v13 = vld [vmem:[#allocation2 + $0x6c] sm:$0xf]  ;;  %v2957_v19 = vld [vmem:[#allocation2 + $0x178] sm:$0xf0] }
  0xc4   :  { %1928 = vmatpush.bf16.msrb.mxu2 %v3596_v27  ;;  %v3152_v27 = vor.u32 %v4206_v14, %v3149_v15  ;;  %v2829_v14 = vld [vmem:[#allocation2 + $0x78] sm:$0xf0]  ;;  %v4158_v15 = vld [vmem:[#allocation2 + $0x16c] sm:$0xf] }
  0xc5   :  { %1941 = vmatpush.bf16.msrb.mxu3 %v3724_v33  ;;  %v1673_v11 = vpop.f32.mrf.mxu2  ;;  %v4170_v33 = vld [vmem:[#allocation2 + $0x1cc] sm:$0xf]  ;;  %v2960_v28 = vor.u32 %v4158_v15, %v2957_v19  ;;  %v3405_v15 = vld [vmem:[#allocation2 + $0x4f8] sm:$0xf0] }
  0xc6   :  { %1903 = vmatpush.bf16.msrb.mxu0 %v3324_v43  ;;  %v1674_v16 = vadd.f32 %v1673_v11, %v1661_v7  ;;  %v1686_v23 = vpop.f32.mrf.mxu3  ;;  %v3133_v43 = vld [vmem:[#allocation2 + $0x2d8] sm:$0xf0]  ;;  %v3008_v48 = vor.u32 %v4170_v33, %v3005_v38  ;;  %v4226_v7 = vld [vmem:[#allocation2 + $0x38c] sm:$0xf]  ;;  %v2976_v11 = vor.u32 %v4162_v2, %v2973_v4 }
  0xc7   :  { %1916 = vmatpush.bf16.msrb.mxu1 %v3452_v45  ;;  %v1649_v35 = vpop.f32.mrf.mxu0  ;;  %v4234_v45 = vld [vmem:[#allocation2 + $0x3cc] sm:$0xf]  ;;  %v3136_v49 = vor.u32 %v4202_v41, %v3133_v43  ;;  %v2941_v41 = vld [vmem:[#allocation2 + $0x158] sm:$0xf0] }
  0xc8   :  { %1929 = vmatpush.bf16.msrb.mxu2 %v3580_v46  ;;  %v1687_v34 = vadd.f32 %v1686_v23, %v1674_v16  ;;  %v1662_v44 = vpop.f32.mrf.mxu1  ;;  %v3261_v46 = vld [vmem:[#allocation2 + $0x3d8] sm:$0xf0]  ;;  %v4190_v20 = vld [vmem:[#allocation2 + $0x26c] sm:$0xf] }
  0xc9   :  { %1942 = vmatpush.bf16.msrb.mxu3 %v3708_v50  ;;  %v4134_v50 = vld [vmem:[#allocation2 + $0xac] sm:$0xf]  ;;  %v3264_v54 = vor.u32 %v4234_v45, %v3261_v46  ;;  %v3213_v23 = vld [vmem:[#allocation2 + $0x378] sm:$0xf0] }
  0xca   :  { %1904 = vmatpush.bf16.msrb.mxu0 %v3308_v57  ;;  %v3117_v57 = vld [vmem:[#allocation2 + $0x2b8] sm:$0xf0]  ;;  %v2864_v60 = vor.u32 %v4134_v50, %v2861_v51  ;;  %v4122_v33 = vld [vmem:[#allocation2 + $0x4c] sm:$0xf] }
  0xcb   :  { %1917 = vmatpush.bf16.msrb.mxu1 %v3436_v62  ;;  %v2992_v62 = vor.u32 %v4166_v52, %v2989_v55  ;;  %v2813_v35 = vld [vmem:[#allocation2 + $0x58] sm:$0xf0]  ;;  %v4186_v43 = vld [vmem:[#allocation2 + $0x24c] sm:$0xf] }
  0xcc   :  { %1930 = vmatpush.bf16.msrb.mxu2 %v3564_v63  ;;  %v3120_v63 = vor.u32 %v4198_v56, %v3117_v57  ;;  %v3069_v44 = vld [vmem:[#allocation2 + $0x258] sm:$0xf0]  ;;  %v4150_v56 = vld [vmem:[#allocation2 + $0x12c] sm:$0xf] }
  0xcd   :  { %1943 = vmatpush.bf16.msrb.mxu3 %v3692_v3  ;;  %v1675_v53 = vpop.f32.mrf.mxu2  ;;  %v3248_v3 = vor.u32 %v4230_v58, %v3245_v59  ;;  %v2797_v55 = vld [vmem:[#allocation2 + $0x38] sm:$0xf0]  ;;  %v4114_v1 = vld [vmem:[#allocation2 + $0xc] sm:$0xf] }
  0xce   :  { %1905 = vmatpush.bf16.msrb.mxu0 %v3292_v12  ;;  %v1688_v61 = vpop.f32.mrf.mxu3  ;;  %v3104_v12 = vor.u32 %v4194_v5, %v3101_v6  ;;  %v3072_v53 = vor.u32 %v4186_v43, %v3069_v44  ;;  %v2925_v59 = vld [vmem:[#allocation2 + $0x138] sm:$0xf0]  ;;  %v4146_v5 = vld [vmem:[#allocation2 + $0x10c] sm:$0xf] }
  0xcf   :  { %1918 = vmatpush.bf16.msrb.mxu1 %v3420_v17  ;;  %v3053_v61 = vld [vmem:[#allocation2 + $0x238] sm:$0xf0]  ;;  %v4334_v19 = vld [vmem:[#allocation2 + $0x6ec] sm:$0xf] }
  0xd0   :  { %1931 = vmatpush.bf16.msrb.mxu2 %v3548_v18  ;;  %v3232_v18 = vor.u32 %v4226_v7, %v3229_v8  ;;  %v2781_v2 = vld [vmem:[#allocation2 + $0x18] sm:$0xf0]  ;;  %v4178_v7 = vld [vmem:[#allocation2 + $0x20c] sm:$0xf] }
  0xd1   :  { %1944 = vmatpush.bf16.msrb.mxu3 %v3676_v21  ;;  %1906 = vmatmul.bf16.vlgmr.msrb.gmra.mxu0 %v4591_v39  ;;  %v1699_v10 = vpop.f32.mrf.mxu0  ;;  %v3085_v21 = vld [vmem:[#allocation2 + $0x278] sm:$0xf0]  ;;  %v4330_v43 = vld [vmem:[#allocation2 + $0x6cc] sm:$0xf] }
  0xd2   :  { %1950 = vmatpush.bf16.msra.mxu0 %v2896_v22  ;;  %1919 = vmatmul.bf16.vlgmr.msrb.gmra.mxu1 %v4595_v42  ;;  %v1700_v16 = vadd.f32 %v1699_v10, %v1687_v34  ;;  %v1712_v17 = vpop.f32.mrf.mxu1  ;;  %v4222_v22 = vld [vmem:[#allocation2 + $0x36c] sm:$0xf]  ;;  %v3088_v29 = vor.u32 %v4190_v20, %v3085_v21  ;;  %v2909_v6 = vld [vmem:[#allocation2 + $0x118] sm:$0xf0] }
  0xd3   :  { %1963 = vmatpush.bf16.msra.mxu1 %v3024_v24  ;;  %1932 = vmatmul.bf16.vlgmr.msrb.gmra.mxu2 %v4589_v36  ;;  %v3216_v34 = vor.u32 %v4222_v22, %v3213_v23  ;;  %v3037_v10 = vld [vmem:[#allocation2 + $0x218] sm:$0xf0]  ;;  %v2912_v21 = vor.u32 %v4146_v5, %v2909_v6  ;;  %v4366_v23 = vld [vmem:[#allocation2 + $0x7ec] sm:$0xf] }
  0xd4   :  { %1976 = vmatpush.bf16.msra.mxu2 %v3152_v27  ;;  %1945 = vmatmul.bf16.vlgmr.msrb.gmra.mxu3 %v4593_v40  ;;  %v1713_v24 = vadd.f32 %v1712_v17, %v1700_v16  ;;  %v2832_v27 = vor.u32 %v4126_v13, %v2829_v14  ;;  %v4270_v14 = vld [vmem:[#allocation2 + $0x4ec] sm:$0xf]  ;;  %v2784_v17 = vor.u32 %v4114_v1, %v2781_v2  ;;  %v3661_v20 = vld [vmem:[#allocation2 + $0x6f8] sm:$0xf0] }
  0xd5   :  { %1989 = vmatpush.bf16.msra.mxu3 %v3280_v37  ;;  %v4154_v37 = vld [vmem:[#allocation2 + $0x14c] sm:$0xf]  ;;  %v3040_v22 = vor.u32 %v4178_v7, %v3037_v10  ;;  %v3645_v44 = vld [vmem:[#allocation2 + $0x6d8] sm:$0xf0] }
  0xd6   :  { %1951 = vmatpush.bf16.msra.mxu0 %v2880_v47  ;;  %v1725_v38 = vpop.f32.mrf.mxu2  ;;  %v4218_v47 = vld [vmem:[#allocation2 + $0x34c] sm:$0xf]  ;;  %v2944_v52 = vor.u32 %v4154_v37, %v2941_v41  ;;  %v3389_v37 = vld [vmem:[#allocation2 + $0x4d8] sm:$0xf0] }
  0xd7   :  { %1964 = vmatpush.bf16.msra.mxu1 %v3008_v48  ;;  %v1726_v45 = vadd.f32 %v1725_v38, %v1713_v24  ;;  %v3197_v48 = vld [vmem:[#allocation2 + $0x358] sm:$0xf0]  ;;  %v4302_v16 = vld [vmem:[#allocation2 + $0x5ec] sm:$0xf] }
  0xd8   :  { %1977 = vmatpush.bf16.msra.mxu2 %v3136_v49  ;;  %v2816_v49 = vor.u32 %v4122_v33, %v2813_v35  ;;  %v3200_v58 = vor.u32 %v4218_v47, %v3197_v48  ;;  %v3789_v24 = vld [vmem:[#allocation2 + $0x7f8] sm:$0xf0]  ;;  %v3664_v33 = vor.u32 %v4334_v19, %v3661_v20  ;;  %v4266_v35 = vld [vmem:[#allocation2 + $0x4cc] sm:$0xf] }
  0xd9   :  { %1990 = vmatpush.bf16.msra.mxu3 %v3264_v54  ;;  %v1738_v46 = vpop.f32.mrf.mxu3  ;;  %v1701_v51 = vpop.f32.mrf.mxu0  ;;  %v4118_v54 = vld [vmem:[#allocation2 + $0x2c] sm:$0xf]  ;;  %v3517_v41 = vld [vmem:[#allocation2 + $0x5d8] sm:$0xf0]  ;;  %v3392_v47 = vor.u32 %v4266_v35, %v3389_v37 }
  0xda   :  { %1952 = vmatpush.bf16.msra.mxu0 %v2864_v60  ;;  %v4623_v50 = vadd.f32 %v1738_v46, %v1726_v45  ;;  %v1714_v57 = vpop.f32.mrf.mxu1  ;;  %v4182_v60 = vld [vmem:[#allocation2 + $0x22c] sm:$0xf]  ;;  %v2800_v0 = vor.u32 %v4118_v54, %v2797_v55  ;;  %v3773_v46 = vld [vmem:[#allocation2 + $0x7d8] sm:$0xf0] }
  0xdb   :  { %1965 = vmatpush.bf16.msra.mxu1 %v2992_v62  ;;  %v4214_v62 = vld [vmem:[#allocation2 + $0x32c] sm:$0xf]  ;;  %v3056_v4 = vor.u32 %v4182_v60, %v3053_v61  ;;  %v3501_v55 = vld [vmem:[#allocation2 + $0x5b8] sm:$0xf0] }
  0xdc   :  { %1978 = vmatpush.bf16.msra.mxu2 %v3120_v63  ;;  %v3181_v63 = vld [vmem:[#allocation2 + $0x338] sm:$0xf0]  ;;  %v4298_v38 = vld [vmem:[#allocation2 + $0x5cc] sm:$0xf]  ;;  %vm2054_vm1 = vcmp.ge.f32.partialorder %v4623_v50, 0.0 }
  0xdd   :  { %1991 = vmatpush.bf16.msra.mxu3 %v3248_v3  ;;  %v2928_v3 = vor.u32 %v4150_v56, %v2925_v59  ;;  %v4362_v45 = vld [vmem:[#allocation2 + $0x7cc] sm:$0xf]  ;;  %v3520_v48 = vor.u32 %v4298_v38, %v3517_v41  ;;  %v3629_v57 = vld [vmem:[#allocation2 + $0x6b8] sm:$0xf0] }
  0xde   :  { %1953 = vmatpush.bf16.msra.mxu0 %v2848_v9  ;;  %v1727_v8 = vpop.f32.mrf.mxu2  ;;  %v3184_v9 = vor.u32 %v4214_v62, %v3181_v63  ;;  %v4262_v51 = vld [vmem:[#allocation2 + $0x4ac] sm:$0xf]  ;;  %v3776_v54 = vor.u32 %v4362_v45, %v3773_v46  ;;  %v3757_v59 = vld [vmem:[#allocation2 + $0x7b8] sm:$0xf0] }
  0xdf   :  { %1966 = vmatpush.bf16.msra.mxu1 %v2976_v11  ;;  %v4210_v11 = vld [vmem:[#allocation2 + $0x30c] sm:$0xf]  ;;  %v3485_v2 = vld [vmem:[#allocation2 + $0x598] sm:$0xf0] }
  0xe0   :  { %1979 = vmatpush.bf16.msra.mxu2 %v3104_v12  ;;  %v3165_v12 = vld [vmem:[#allocation2 + $0x318] sm:$0xf0]  ;;  %v4326_v56 = vld [vmem:[#allocation2 + $0x6ac] sm:$0xf] }
  0xe1   :  { %1992 = vmatpush.bf16.msra.mxu3 %v3232_v18  ;;  %v1740_v13 = vpop.f32.mrf.mxu3  ;;  %v3533_v18 = vld [vmem:[#allocation2 + $0x5f8] sm:$0xf0]  ;;  %v3632_v62 = vor.u32 %v4326_v56, %v3629_v57  ;;  %v4258_v63 = vld [vmem:[#allocation2 + $0x48c] sm:$0xf]  ;;  %v351_v56 = vperm.slane %v4616_v30, 1 }
  0xe2   :  { %1954 = vmatpush.bf16.msra.mxu0 %v2832_v27  ;;  %v3168_v27 = vor.u32 %v4210_v11, %v3165_v12  ;;  %v4354_v5 = vld [vmem:[#allocation2 + $0x78c] sm:$0xf]  ;;  %v3469_v13 = vld [vmem:[#allocation2 + $0x578] sm:$0xf0] }
  0xe3   :  { %1967 = vmatpush.bf16.msra.mxu1 %v2960_v28  ;;  %v3408_v28 = vor.u32 %v4270_v14, %v3405_v15  ;;  %v4254_v8 = vld [vmem:[#allocation2 + $0x46c] sm:$0xf]  ;;  %v3597_v15 = vld [vmem:[#allocation2 + $0x678] sm:$0xf0] }
  0xe4   :  { %1980 = vmatpush.bf16.msra.mxu2 %v3088_v29  ;;  %v3536_v29 = vor.u32 %v4302_v16, %v3533_v18  ;;  %v4286_v10 = vld [vmem:[#allocation2 + $0x56c] sm:$0xf]  ;;  %v3709_v38 = vld [vmem:[#allocation2 + $0x758] sm:$0xf0] }
  0xe5   :  { %1993 = vmatpush.bf16.msra.mxu3 %v3216_v34  ;;  %v3792_v34 = vor.u32 %v4366_v23, %v3789_v24  ;;  %v4318_v14 = vld [vmem:[#allocation2 + $0x66c] sm:$0xf]  ;;  %v3472_v19 = vor.u32 %v4286_v10, %v3469_v13  ;;  %v3309_v46 = vld [vmem:[#allocation2 + $0x438] sm:$0xf0] }
  0xe6   :  { %1955 = vmatpush.bf16.msra.mxu0 %v2816_v49  ;;  %v3648_v49 = vor.u32 %v4330_v43, %v3645_v44  ;;  %v4350_v16 = vld [vmem:[#allocation2 + $0x76c] sm:$0xf]  ;;  %v3600_v20 = vor.u32 %v4318_v14, %v3597_v15  ;;  %v3677_v30 = vld [vmem:[#allocation2 + $0x718] sm:$0xf0] }
  0xe7   :  { %1968 = vmatpush.bf16.msra.mxu1 %v2944_v52  ;;  %v3373_v52 = vld [vmem:[#allocation2 + $0x4b8] sm:$0xf0]  ;;  %v4282_v23 = vld [vmem:[#allocation2 + $0x54c] sm:$0xf] }
  0xe8   :  { %1981 = vmatpush.bf16.msra.mxu2 %v3072_v53  ;;  %v4294_v53 = vld [vmem:[#allocation2 + $0x5ac] sm:$0xf]  ;;  %v3376_v60 = vor.u32 %v4262_v51, %v3373_v52  ;;  %v3437_v51 = vld [vmem:[#allocation2 + $0x538] sm:$0xf0] }
  0xe9   :  { %1994 = vmatpush.bf16.msra.mxu3 %v3200_v58  ;;  %v4358_v58 = vld [vmem:[#allocation2 + $0x7ac] sm:$0xf]  ;;  %v3504_v61 = vor.u32 %v4294_v53, %v3501_v55  ;;  %v3565_v53 = vld [vmem:[#allocation2 + $0x638] sm:$0xf0] }
  0xea   :  { %1956 = vmatpush.bf16.msra.mxu0 %v2800_v0  ;;  %v3357_v0 = vld [vmem:[#allocation2 + $0x498] sm:$0xf0]  ;;  %v3760_v1 = vor.u32 %v4358_v58, %v3757_v59  ;;  %v4346_v37 = vld [vmem:[#allocation2 + $0x74c] sm:$0xf] }
  0xeb   :  { %1969 = vmatpush.bf16.msra.mxu1 %v2928_v3  ;;  %v4322_v3 = vld [vmem:[#allocation2 + $0x68c] sm:$0xf]  ;;  %v3693_v55 = vld [vmem:[#allocation2 + $0x738] sm:$0xf0] }
  0xec   :  { %1982 = vmatpush.bf16.msra.mxu2 %v3056_v4  ;;  %v3613_v4 = vld [vmem:[#allocation2 + $0x698] sm:$0xf0]  ;;  %v4246_v45 = vld [vmem:[#allocation2 + $0x42c] sm:$0xf] }
  0xed   :  { %1995 = vmatpush.bf16.msra.mxu3 %v3184_v9  ;;  %v3616_v7 = vor.u32 %v4322_v3, %v3613_v4  ;;  %v3341_v9 = vld [vmem:[#allocation2 + $0x478] sm:$0xf0]  ;;  %v4310_v52 = vld [vmem:[#allocation2 + $0x62c] sm:$0xf]  ;;  %v3312_v57 = vor.u32 %v4246_v45, %v3309_v46  ;;  %v3819_v46 = vld [vmem:[#allocation4 + $0x30] sm:$0xf] }
  0xee   :  { %1957 = vmatpush.bf16.msra.mxu0 %v2784_v17  ;;  %v4629_v6 = vpop.f32.mrf.mxu0  ;;  %v3725_v17 = vld [vmem:[#allocation2 + $0x778] sm:$0xf0]  ;;  %v3344_v18 = vor.u32 %v4254_v8, %v3341_v9  ;;  %v4242_v58 = vld [vmem:[#allocation2 + $0x40c] sm:$0xf]  ;;  %v4400_v8 = vld [vmem:[#allocation4 + $0xf4] sm:$0xf0] }
  0xef   :  { %1970 = vmatpush.bf16.msra.mxu1 %v2912_v21  ;;  %v4631_v11 = vpop.f32.mrf.mxu1  ;;  %v4250_v21 = vld [vmem:[#allocation2 + $0x44c] sm:$0xf] }
  0xf0   :  { %1983 = vmatpush.bf16.msra.mxu2 %v3040_v22  ;;  %v3325_v22 = vld [vmem:[#allocation2 + $0x458] sm:$0xf0]  ;;  %v4338_v3 = vld [vmem:[#allocation2 + $0x70c] sm:$0xf] }
  0xf1   :  { %1996 = vmatpush.bf16.msra.mxu3 %v3168_v27  ;;  %1958 = vmatmul.bf16.vlgmr.msra.gmra.mxu0 %v4576_v26  ;;  %v3741_v26 = vld [vmem:[#allocation2 + $0x798] sm:$0xf0]  ;;  %v3728_v27 = vor.u32 %v4350_v16, %v3725_v17  ;;  %v3843_v16 = vld [vmem:[#allocation4 + $0x60] sm:$0xf]  ;;  %v4382_v17 = vld [vmem:[#allocation4 + $0x64] sm:$0xf0] }
  0xf2   :  { %2002 = vmatpush.bf16.msrb.mxu0 %v3408_v28  ;;  %1971 = vmatmul.bf16.vlgmr.msra.gmra.mxu1 %v4580_v32  ;;  %v3744_v12 = vor.u32 %v4354_v5, %v3741_v26  ;;  %v3453_v28 = vld [vmem:[#allocation2 + $0x558] sm:$0xf0]  ;;  %v1752_v5 = vadd.f32 %v4629_v6, %v351_v56  ;;  %v3851_v26 = vld [vmem:[#allocation4 + $0x70] sm:$0xf]  ;;  %v3907_v6 = vld [vmem:[#allocation4 + $0xe0] sm:$0xf] }
  0xf3   :  { %2015 = vmatpush.bf16.msrb.mxu1 %v3536_v29  ;;  %1984 = vmatmul.bf16.vlgmr.msra.gmra.mxu2 %v4574_v25  ;;  %v4290_v25 = vld [vmem:[#allocation2 + $0x58c] sm:$0xf]  ;;  %v3456_v43 = vor.u32 %v4282_v23, %v3453_v28  ;;  %v4380_v23 = vld [vmem:[#allocation4 + $0x54] sm:$0xf0] }
  0xf4   :  { %2028 = vmatpush.bf16.msrb.mxu2 %v3664_v33  ;;  %1997 = vmatmul.bf16.vlgmr.msra.gmra.mxu3 %v4578_v31  ;;  %v3360_v31 = vor.u32 %v4258_v63, %v3357_v0  ;;  %v3488_v32 = vor.u32 %v4290_v25, %v3485_v2  ;;  %v4314_v29 = vld [vmem:[#allocation2 + $0x64c] sm:$0xf]  ;;  %v3581_v33 = vld [vmem:[#allocation2 + $0x658] sm:$0xf0]  ;;  %v1765_v14 = vadd.f32 %v4631_v11, %v1752_v5  ;;  %v3899_v11 = vld [vmem:[#allocation4 + $0xd0] sm:$0xf] }
  0xf5   :  { %2041 = vmatpush.bf16.msrb.mxu3 %v3792_v34  ;;  %v3328_v34 = vor.u32 %v4250_v21, %v3325_v22  ;;  %v3584_v44 = vor.u32 %v4314_v29, %v3581_v33  ;;  %v3421_v63 = vld [vmem:[#allocation2 + $0x518] sm:$0xf0]  ;;  %v3835_v22 = vld [vmem:[#allocation4 + $0x50] sm:$0xf] }
  0xf6   :  { %2003 = vmatpush.bf16.msrb.mxu0 %v3392_v47  ;;  %v4633_v24 = vpop.f32.mrf.mxu2  ;;  %v1753_v41 = vpop.f32.mrf.mxu0  ;;  %v4278_v47 = vld [vmem:[#allocation2 + $0x52c] sm:$0xf]  ;;  %v3549_v2 = vld [vmem:[#allocation2 + $0x618] sm:$0xf0]  ;;  %v3836_v28 = vor.u32 %v4380_v23, %v3835_v22 }
  0xf7   :  { %2016 = vmatpush.bf16.msrb.mxu1 %v3520_v48  ;;  %v4635_v35 = vpop.f32.mrf.mxu3  ;;  %v1766_v48 = vpop.f32.mrf.mxu1  ;;  %v3440_v59 = vor.u32 %v4278_v47, %v3437_v51  ;;  %v4416_v41 = vld [vmem:[#allocation4 + $0x174] sm:$0xf0]  ;;  %v4414_v51 = vld [vmem:[#allocation4 + $0x164] sm:$0xf0]  ;;  %v3853_v23 = vld [vmem:[#allocation4 + $0x78] sm:$0xf0] }
  0xf8   :  { %2029 = vmatpush.bf16.msrb.mxu2 %v3648_v49  ;;  %v3712_v49 = vor.u32 %v4346_v37, %v3709_v38  ;;  %v4378_v37 = vld [vmem:[#allocation4 + $0x44] sm:$0xf0]  ;;  %v4376_v47 = vld [vmem:[#allocation4 + $0x34] sm:$0xf0]  ;;  %v3883_v48 = vld [vmem:[#allocation4 + $0xb0] sm:$0xf] }
  0xf9   :  { %2042 = vmatpush.bf16.msrb.mxu3 %v3776_v54  ;;  %v4342_v54 = vld [vmem:[#allocation2 + $0x72c] sm:$0xf]  ;;  %v4394_v38 = vld [vmem:[#allocation4 + $0xc4] sm:$0xf0] }
  0xfa   :  { %2004 = vmatpush.bf16.msrb.mxu0 %v3376_v60  ;;  %v3568_v60 = vor.u32 %v4310_v52, %v3565_v53  ;;  %v3696_v25 = vor.u32 %v4342_v54, %v3693_v55  ;;  %v3820_v54 = vor.u32 %v4376_v47, %v3819_v46 }
  0xfb   :  { %2017 = vmatpush.bf16.msrb.mxu1 %v3504_v61  ;;  %v3293_v61 = vld [vmem:[#allocation2 + $0x418] sm:$0xf0] }
  0xfc   :  { %2030 = vmatpush.bf16.msrb.mxu2 %v3632_v62  ;;  %v4274_v62 = vld [vmem:[#allocation2 + $0x50c] sm:$0xf] }
  0xfd   :  { %2043 = vmatpush.bf16.msrb.mxu3 %v3760_v1  ;;  %v4306_v1 = vld [vmem:[#allocation2 + $0x60c] sm:$0xf]  ;;  %v3424_v9 = vor.u32 %v4274_v62, %v3421_v63  ;;  %v4390_v62 = vld [vmem:[#allocation4 + $0xa4] sm:$0xf0]  ;;  %v3963_v63 = vld [vmem:[#allocation4 + $0x150] sm:$0xf] }
  0xfe   :  { %2005 = vmatpush.bf16.msrb.mxu0 %v3360_v31  ;;  %v1779_v0 = vpop.f32.mrf.mxu2  ;;  %v4384_v31 = vld [vmem:[#allocation4 + $0x74] sm:$0xf0]  ;;  %v3552_v10 = vor.u32 %v4306_v1, %v3549_v2  ;;  %v2058_v1 = vmul.f32 0.2, %v4623_v50 }
  0xff   :  { %2018 = vmatpush.bf16.msrb.mxu1 %v3488_v32  ;;  %v1792_v4 = vpop.f32.mrf.mxu3  ;;  %v3296_v32 = vor.u32 %v4242_v58, %v3293_v61  ;;  %v3852_v13 = vor.u32 %v4384_v31, %v3851_v26  ;;  %v4374_v58 = vld [vmem:[#allocation4 + $0x24] sm:$0xf0]  ;;  %v4412_v0 = vld [vmem:[#allocation4 + $0x154] sm:$0xf0]  ;;  %v3867_v31 = vld [vmem:[#allocation4 + $0x90] sm:$0xf] }
 0x100   :  { %2031 = vmatpush.bf16.msrb.mxu2 %v3616_v7  ;;  %v3915_v7 = vld [vmem:[#allocation4 + $0xf0] sm:$0xf]  ;;  %v4372_v26 = vld [vmem:[#allocation4 + $0x14] sm:$0xf0]  ;;  %v2062_v22 = vsel %vm2054_vm1, %v4623_v50, %v2058_v1  ;;  %v4397_v50 = vld [vmem:[#allocation4 + $0xe4] sm:$0xf] }
 0x101   :  { %2044 = vmatpush.bf16.msrb.mxu3 %v3744_v12  ;;  %v3680_v12 = vor.u32 %v4338_v3, %v3677_v30  ;;  %v3916_v15 = vor.u32 %v4400_v8, %v3915_v7  ;;  %v3803_v4 = vld [vmem:[#allocation4 + $0x10] sm:$0xf]  ;;  %v4656_v47 = vpack.c.bf16 %v2062_v22, %v2062_v22  ;;  %v4393_v1 = vld [vmem:[#allocation4 + $0xc4] sm:$0xf] }
 0x102   :  { %2006 = vmatpush.bf16.msrb.mxu0 %v3344_v18  ;;  %v4398_v18 = vld [vmem:[#allocation4 + $0xe4] sm:$0xf0] }
 0x103   :  { %2019 = vmatpush.bf16.msrb.mxu1 %v3472_v19  ;;  %v3844_v19 = vor.u32 %v4382_v17, %v3843_v16  ;;  %v3908_v21 = vor.u32 %v4398_v18, %v3907_v6  ;;  %v3859_v16 = vld [vmem:[#allocation4 + $0x80] sm:$0xf] }
 0x104   :  { %2032 = vmatpush.bf16.msrb.mxu2 %v3600_v20  ;;  %v1778_v20 = vadd.f32 %v4633_v24, %v1765_v14  ;;  %v3827_v24 = vld [vmem:[#allocation4 + $0x40] sm:$0xf] }
 0x105   :  { %2045 = vmatpush.bf16.msrb.mxu3 %v3728_v27  ;;  %v4396_v27 = vld [vmem:[#allocation4 + $0xd4] sm:$0xf0]  ;;  %v3795_v14 = vld [vmem:[#allocation4] sm:$0xf] }
 0x106   :  { %2007 = vmatpush.bf16.msrb.mxu0 %v3328_v34  ;;  %v1791_v29 = vadd.f32 %v4635_v35, %v1778_v20  ;;  %v3900_v33 = vor.u32 %v4396_v27, %v3899_v11  ;;  %v3979_v34 = vld [vmem:[#allocation4 + $0x170] sm:$0xf]  ;;  %v4392_v35 = vld [vmem:[#allocation4 + $0xb4] sm:$0xf0]  ;;  %v4383_v20 = vld [vmem:[#allocation4 + $0x74] sm:$0xf] }
 0x107   :  { %2020 = vmatpush.bf16.msrb.mxu1 %v3456_v43  ;;  %v3980_v43 = vor.u32 %v4416_v41, %v3979_v34  ;;  %v3884_v55 = vor.u32 %v4392_v35, %v3883_v48  ;;  %v3947_v27 = vld [vmem:[#allocation4 + $0x130] sm:$0xf]  ;;  %v3856_v34 = vor.u32 %v4383_v20, %v3853_v23  ;;  %v4411_v20 = vld [vmem:[#allocation4 + $0x154] sm:$0xf] }
 0x108   :  { %2033 = vmatpush.bf16.msrb.mxu2 %v3584_v44  ;;  %v3931_v35 = vld [vmem:[#allocation4 + $0x110] sm:$0xf] }
 0x109   :  { %2046 = vmatpush.bf16.msrb.mxu3 %v3712_v49  ;;  %v3971_v49 = vld [vmem:[#allocation4 + $0x160] sm:$0xf] }
 0x10a   :  { %2008 = vmatpush.bf16.msrb.mxu0 %v3312_v57  ;;  %v3972_v53 = vor.u32 %v4414_v51, %v3971_v49  ;;  %v3811_v57 = vld [vmem:[#allocation4 + $0x20] sm:$0xf]  ;;  %v4404_v49 = vld [vmem:[#allocation4 + $0x114] sm:$0xf0] }
 0x10b   :  { %2021 = vmatpush.bf16.msrb.mxu1 %v3440_v59  ;;  %v3875_v59 = vld [vmem:[#allocation4 + $0xa0] sm:$0xf]  ;;  %v3812_v3 = vor.u32 %v4374_v58, %v3811_v57  ;;  %v4402_v58 = vld [vmem:[#allocation4 + $0x104] sm:$0xf0] }
 0x10c   :  { %2034 = vmatpush.bf16.msrb.mxu2 %v3568_v60  ;;  %v3876_v30 = vor.u32 %v4390_v62, %v3875_v59  ;;  %v3923_v57 = vld [vmem:[#allocation4 + $0x100] sm:$0xf]  ;;  %v4415_v59 = vld [vmem:[#allocation4 + $0x174] sm:$0xf] }
 0x10d   :  { %2047 = vmatpush.bf16.msrb.mxu3 %v3696_v25  ;;  %v3964_v25 = vor.u32 %v4412_v0, %v3963_v63  ;;  %v4377_v63 = vld [vmem:[#allocation4 + $0x44] sm:$0xf]  ;;  %v3829_v0 = vld [vmem:[#allocation4 + $0x48] sm:$0xf0] }
 0x10e   :  { %2009 = vmatpush.bf16.msrb.mxu0 %v3296_v32  ;;  %v4388_v32 = vld [vmem:[#allocation4 + $0x94] sm:$0xf0] }
 0x10f   :  { %2022 = vmatpush.bf16.msrb.mxu1 %v3424_v9  ;;  %v3955_v9 = vld [vmem:[#allocation4 + $0x140] sm:$0xf]  ;;  %v3868_v18 = vor.u32 %v4388_v32, %v3867_v31  ;;  %v4391_v31 = vld [vmem:[#allocation4 + $0xb4] sm:$0xf] }
 0x110   :  { %2035 = vmatpush.bf16.msrb.mxu2 %v3552_v10  ;;  %v4410_v10 = vld [vmem:[#allocation4 + $0x144] sm:$0xf0] }
 0x111   :  { %2048 = vmatpush.bf16.msrb.mxu3 %v3680_v12  ;;  %2010 = vmatmul.bf16.vlgmr.msrb.gmra.mxu0 %v4591_v39  ;;  %v3891_v39 = vld [vmem:[#allocation4 + $0xc0] sm:$0xf]  ;;  %v3956_v17 = vor.u32 %v4410_v10, %v3955_v9  ;;  %v4413_v9 = vld [vmem:[#allocation4 + $0x164] sm:$0xf]  ;;  %v3973_v10 = vld [vmem:[#allocation4 + $0x168] sm:$0xf0] }
 0x112   :  { %2475 = vmatpush.bf16.msra.mxu0 %v3852_v13  ;;  %2023 = vmatmul.bf16.vlgmr.msrb.gmra.mxu1 %v4595_v42  ;;  %v3828_v42 = vor.u32 %v4378_v37, %v3827_v24  ;;  %v3892_v44 = vor.u32 %v4394_v38, %v3891_v39  ;;  %v3804_v13 = vor.u32 %v4372_v26, %v3803_v4  ;;  %v3917_v24 = vld [vmem:[#allocation4 + $0xf8] sm:$0xf0] }
 0x113   :  { %2488 = vmatpush.bf16.msra.mxu1 %v3916_v15  ;;  %2036 = vmatmul.bf16.vlgmr.msrb.gmra.mxu2 %v4589_v36  ;;  %v1803_v36 = vpop.f32.mrf.mxu0  ;;  %v4370_v15 = vld [vmem:[#allocation4 + $0x4] sm:$0xf0]  ;;  %v3832_v4 = vor.u32 %v4377_v63, %v3829_v0  ;;  %v3821_v26 = vld [vmem:[#allocation4 + $0x38] sm:$0xf0]  ;;  %v4403_v63 = vld [vmem:[#allocation4 + $0x114] sm:$0xf] }
 0x114   :  { %2049 = vmatmul.bf16.vlgmr.msrb.gmra.mxu3 %v4593_v40  ;;  %v1804_v45 = vadd.f32 %v1803_v36, %v1791_v29  ;;  %v1816_v40 = vpop.f32.mrf.mxu1  ;;  %2501 = vmatpush.bf16.msra.mxu2 %v3980_v43  ;;  %v3796_v39 = vor.u32 %v4370_v15, %v3795_v14  ;;  %v4381_v43 = vld [vmem:[#allocation4 + $0x64] sm:$0xf]  ;;  %v3909_v36 = vld [vmem:[#allocation4 + $0xe8] sm:$0xf0]  ;;  %v3933_v0 = vld [vmem:[#allocation4 + $0x118] sm:$0xf0] }
 0x115   :  { %v3912_v51 = vor.u32 %v4397_v50, %v3909_v36  ;;  %v4373_v15 = vld [vmem:[#allocation4 + $0x24] sm:$0xf] }
 0x116   :  { %2476 = vmatpush.bf16.msra.mxu0 %v3844_v19  ;;  %v1817_v52 = vadd.f32 %v1816_v40, %v1804_v45  ;;  %v1829_v56 = vpop.f32.mrf.mxu2  ;;  %v4386_v19 = vld [vmem:[#allocation4 + $0x84] sm:$0xf0] }
 0x117   :  { %2489 = vmatpush.bf16.msra.mxu1 %v3908_v21  ;;  %v1842_v61 = vpop.f32.mrf.mxu3  ;;  %v3860_v38 = vor.u32 %v4386_v19, %v3859_v16  ;;  %v4406_v45 = vld [vmem:[#allocation4 + $0x124] sm:$0xf0]  ;;  %v3813_v16 = vld [vmem:[#allocation4 + $0x28] sm:$0xf0] }
 0x118   :  { %2502 = vmatpush.bf16.msra.mxu2 %v3972_v53  ;;  %v1830_v60 = vadd.f32 %v1829_v56, %v1817_v52  ;;  %v4379_v52 = vld [vmem:[#allocation4 + $0x54] sm:$0xf]  ;;  %v3837_v53 = vld [vmem:[#allocation4 + $0x58] sm:$0xf0] }
 0x119   :  { %v3901_v56 = vld [vmem:[#allocation4 + $0xd8] sm:$0xf0] }
 0x11a   :  { %2477 = vmatpush.bf16.msra.mxu0 %v3836_v28  ;;  %v1843_v2 = vadd.f32 %v1842_v61, %v1830_v60  ;;  %v4408_v28 = vld [vmem:[#allocation4 + $0x134] sm:$0xf0]  ;;  %v3981_v60 = vld [vmem:[#allocation4 + $0x178] sm:$0xf0]  ;;  %v3840_v61 = vor.u32 %v4379_v52, %v3837_v53 }
 0x11b   :  { %2490 = vmatpush.bf16.msra.mxu1 %v3900_v33  ;;  %v1805_v5 = vpop.f32.mrf.mxu0  ;;  %v4399_v33 = vld [vmem:[#allocation4 + $0xf4] sm:$0xf]  ;;  %v3948_v37 = vor.u32 %v4408_v28, %v3947_v27  ;;  %v3805_v28 = vld [vmem:[#allocation4 + $0x18] sm:$0xf0] }
 0x11c   :  { %v1818_v7 = vpop.f32.mrf.mxu1  ;;  %2503 = vmatpush.bf16.msra.mxu2 %v3964_v25  ;;  %vm2055_vm0 = vcmp.ge.f32.partialorder %v1843_v2, 0.0  ;;  %v2059_v8 = vmul.f32 0.2, %v1843_v2  ;;  %v3920_v41 = vor.u32 %v4399_v33, %v3917_v24  ;;  %v3924_v25 = vor.u32 %v4402_v58, %v3923_v57  ;;  %v4371_v27 = vld [vmem:[#allocation4 + $0x14] sm:$0xf] }
 0x11d   :  { %v3885_v7 = vld [vmem:[#allocation4 + $0xb8] sm:$0xf0]  ;;  %v4387_v24 = vld [vmem:[#allocation4 + $0x94] sm:$0xf]  ;;  %v4043_v58 = vld [vmem:[#allocation4 + $0x1f0] sm:$0xf] }
 0x11e   :  { %2478 = vmatpush.bf16.msra.mxu0 %v3828_v42  ;;  %v2063_v12 = vsel %vm2055_vm0, %v1843_v2, %v2059_v8  ;;  %v1831_v21 = vpop.f32.mrf.mxu2  ;;  %v3845_v42 = vld [vmem:[#allocation4 + $0x68] sm:$0xf0]  ;;  %v3888_v14 = vor.u32 %v4391_v31, %v3885_v7  ;;  %v4430_v31 = vld [vmem:[#allocation4 + $0x1e4] sm:$0xf0] }
 0x11f   :  { %2491 = vmatpush.bf16.msra.mxu1 %v3892_v44  ;;  %v2070_v6 = vrot.slane %v2063_v12, 6  ;;  %v1844_v11 = vpop.f32.mrf.mxu3  ;;  %v3939_v44 = vld [vmem:[#allocation4 + $0x120] sm:$0xf]  ;;  %v4654_v40 = vpack.c.bf16 %v2063_v12, %v2063_v12  ;;  %v3848_v48 = vor.u32 %v4381_v43, %v3845_v42  ;;  %v3893_v2 = vld [vmem:[#allocation4 + $0xc8] sm:$0xf0]  ;;  %v3976_v12 = vor.u32 %v4413_v9, %v3973_v10 }
 0x120   :  { %2504 = vmatpush.bf16.msra.mxu2 %v3956_v17  ;;  %v3940_v46 = vor.u32 %v4406_v45, %v3939_v44  ;;  %v3896_v5 = vor.u32 %v4393_v1, %v3893_v2  ;;  %v4389_v17 = vld [vmem:[#allocation4 + $0xa4] sm:$0xf]  ;;  %v3965_v21 = vld [vmem:[#allocation4 + $0x158] sm:$0xf0]  ;;  %v4665_v43 = vld [vmem:[%s4744_s2] sm:$0xf]  ;;  %v3936_v1 = vor.u32 %v4403_v63, %v3933_v0 }
 0x121   :  { %v4652_v29 = vsel %vm2073_vm2, %v2062_v22, %v2070_v6  ;;  %v3877_v6 = vld [vmem:[#allocation4 + $0xa8] sm:$0xf0]  ;;  %v3816_v22 = vor.u32 %v4373_v15, %v3813_v16  ;;  %v3968_v23 = vor.u32 %v4411_v20, %v3965_v21  ;;  %v352_v42 = vperm.slane %v4665_v43, 2  ;;  %v4369_v44 = vld [vmem:[#allocation4 + $0x4] sm:$0xf] }
 0x122   :  { %2479 = vmatpush.bf16.msra.mxu0 %v3820_v54  ;;  %v4395_v54 = vld [vmem:[#allocation4 + $0xd4] sm:$0xf]  ;;  %v3880_v11 = vor.u32 %v4389_v17, %v3877_v6  ;;  %v3797_v45 = vld [vmem:[#allocation4 + $0x8] sm:$0xf0]  ;;  %v4401_v2 = vld [vmem:[#allocation4 + $0x104] sm:$0xf] }
 0x123   :  { %2492 = vmatpush.bf16.msra.mxu1 %v3884_v55  ;;  %v3932_v55 = vor.u32 %v4404_v49, %v3931_v35  ;;  %v3904_v62 = vor.u32 %v4395_v54, %v3901_v56  ;;  %v4407_v49 = vld [vmem:[#allocation4 + $0x134] sm:$0xf]  ;;  %v4405_v54 = vld [vmem:[#allocation4 + $0x124] sm:$0xf]  ;;  %v3800_v57 = vor.u32 %v4369_v44, %v3797_v45  ;;  %v4027_v10 = vld [vmem:[#allocation4 + $0x1d0] sm:$0xf] }
 0x124   :  { %2505 = vmatpush.bf16.msra.mxu2 %v3948_v37  ;;  %v3869_v37 = vld [vmem:[#allocation4 + $0x98] sm:$0xf0]  ;;  %v4426_v17 = vld [vmem:[#allocation4 + $0x1c4] sm:$0xf0]  ;;  %v4431_v45 = vld [vmem:[#allocation4 + $0x1f4] sm:$0xf] }
 0x125   :  { %v3872_v36 = vor.u32 %v4387_v24, %v3869_v37  ;;  %v353_v0 = vperm.slane %v4665_v43, 3 }
 0x126   :  { %2480 = vmatpush.bf16.msra.mxu0 %v3812_v3  ;;  %v3984_v3 = vor.u32 %v4415_v59, %v3981_v60  ;;  %v4432_v60 = vld [vmem:[#allocation4 + $0x1f4] sm:$0xf0] }
 0x127   :  { %2493 = vmatpush.bf16.msra.mxu1 %v3876_v30  ;;  %v4375_v30 = vld [vmem:[#allocation4 + $0x34] sm:$0xf] }
 0x128   :  { %2506 = vmatpush.bf16.msra.mxu2 %v3940_v46  ;;  %v4385_v46 = vld [vmem:[#allocation4 + $0x84] sm:$0xf] }
 0x12a   :  { %2481 = vmatpush.bf16.msra.mxu0 %v3804_v13  ;;  %v3824_v13 = vor.u32 %v4375_v30, %v3821_v26  ;;  %v4035_v26 = vld [vmem:[#allocation4 + $0x1e0] sm:$0xf] }
 0x12b   :  { %2494 = vmatpush.bf16.msra.mxu1 %v3868_v18  ;;  %v4036_v7 = vor.u32 %v4430_v31, %v4035_v26 }
 0x12c   :  { %2507 = vmatpush.bf16.msra.mxu2 %v3932_v55  ;;  %v3941_v55 = vld [vmem:[#allocation4 + $0x128] sm:$0xf0] }
 0x12e   :  { %2482 = vmatpush.bf16.msra.mxu0 %v3796_v39  ;;  %v1855_v32 = vpop.f32.mrf.mxu0 }
 0x12f   :  { %2495 = vmatpush.bf16.msra.mxu1 %v3860_v38  ;;  %v4660_v8 = vpop.f32.mrf.mxu1  ;;  %v4409_v38 = vld [vmem:[#allocation4 + $0x144] sm:$0xf]  ;;  %v1856_v56 = vadd.f32 %v1855_v32, %v352_v42 }
 0x130   :  { %2508 = vmatpush.bf16.msra.mxu2 %v3924_v25 }
 0x131   :  { %2483 = vmatmul.bf16.vlgmr.msra.gmra.mxu0 %v4656_v47  ;;  %v1869_v25 = vadd.f32 %v4660_v8, %v1856_v56 }
 0x132   :  { %2527 = vmatpush.bf16.msrb.mxu0 %v3856_v34  ;;  %2496 = vmatmul.bf16.vlgmr.msra.gmra.mxu1 %v4654_v40  ;;  %v3957_v34 = vld [vmem:[#allocation4 + $0x148] sm:$0xf0] }
 0x133   :  { %2540 = vmatpush.bf16.msrb.mxu1 %v3920_v41  ;;  %v3808_v41 = vor.u32 %v4371_v27, %v3805_v28  ;;  %v3960_v50 = vor.u32 %v4409_v38, %v3957_v34  ;;  %v4003_v28 = vld [vmem:[#allocation4 + $0x1a0] sm:$0xf]  ;;  %v3995_v34 = vld [vmem:[#allocation4 + $0x190] sm:$0xf] }
 0x134   :  { %2553 = vmatpush.bf16.msrb.mxu2 %v3984_v3  ;;  %v3925_v3 = vld [vmem:[#allocation4 + $0x108] sm:$0xf0] }
 0x136   :  { %2528 = vmatpush.bf16.msrb.mxu0 %v3848_v48  ;;  %v1881_v18 = vpop.f32.mrf.mxu2  ;;  %v1857_v33 = vpop.f32.mrf.mxu0  ;;  %v3861_v48 = vld [vmem:[#allocation4 + $0x88] sm:$0xf0] }
 0x137   :  { %2541 = vmatpush.bf16.msrb.mxu1 %v3912_v51  ;;  %v1894_v19 = vpop.f32.mrf.mxu3  ;;  %v1870_v39 = vpop.f32.mrf.mxu1  ;;  %v3949_v51 = vld [vmem:[#allocation4 + $0x138] sm:$0xf0]  ;;  %v3864_v59 = vor.u32 %v4385_v46, %v3861_v48  ;;  %v4422_v33 = vld [vmem:[#allocation4 + $0x1a4] sm:$0xf0] }
 0x138   :  { %2554 = vmatpush.bf16.msrb.mxu2 %v3976_v12  ;;  %v3952_v53 = vor.u32 %v4407_v49, %v3949_v51  ;;  %v4428_v12 = vld [vmem:[#allocation4 + $0x1d4] sm:$0xf0]  ;;  %v4004_v38 = vor.u32 %v4422_v33, %v4003_v28  ;;  %v4045_v46 = vld [vmem:[#allocation4 + $0x1f8] sm:$0xf0]  ;;  %v4037_v49 = vld [vmem:[#allocation4 + $0x1e8] sm:$0xf0] }
 0x139   :  { %v4048_v48 = vor.u32 %v4431_v45, %v4045_v46 }
 0x13a   :  { %2529 = vmatpush.bf16.msrb.mxu0 %v3840_v61  ;;  %v3944_v61 = vor.u32 %v4405_v54, %v3941_v55  ;;  %v4427_v54 = vld [vmem:[#allocation4 + $0x1d4] sm:$0xf]  ;;  %v4029_v55 = vld [vmem:[#allocation4 + $0x1d8] sm:$0xf0] }
 0x13b   :  { %2542 = vmatpush.bf16.msrb.mxu1 %v3904_v62  ;;  %v4044_v62 = vor.u32 %v4432_v60, %v4043_v58  ;;  %v4425_v60 = vld [vmem:[#allocation4 + $0x1c4] sm:$0xf] }
 0x13c   :  { %2555 = vmatpush.bf16.msrb.mxu2 %v3968_v23 }
 0x13d   :  { %2514 = vmatpush.bf16.msra.mxu3 %v4044_v62 }
 0x13e   :  { %2530 = vmatpush.bf16.msrb.mxu0 %v3832_v4  ;;  %v1883_v35 = vpop.f32.mrf.mxu2  ;;  %v1882_v4 = vadd.f32 %v1881_v18, %v1869_v25  ;;  %v4011_v18 = vld [vmem:[#allocation4 + $0x1b0] sm:$0xf]  ;;  %v4423_v25 = vld [vmem:[#allocation4 + $0x1b4] sm:$0xf] }
 0x13f   :  { %2543 = vmatpush.bf16.msrb.mxu1 %v3896_v5  ;;  %v1896_v52 = vpop.f32.mrf.mxu3  ;;  %v3928_v5 = vor.u32 %v4401_v2, %v3925_v3  ;;  %v4429_v35 = vld [vmem:[#allocation4 + $0x1e4] sm:$0xf] }
 0x140   :  { %2556 = vmatpush.bf16.msrb.mxu2 %v3960_v50  ;;  %v1895_v30 = vadd.f32 %v1894_v19, %v1882_v4  ;;  %v4424_v19 = vld [vmem:[#allocation4 + $0x1b4] sm:$0xf0]  ;;  %v3987_v50 = vld [vmem:[#allocation4 + $0x180] sm:$0xf]  ;;  %v4040_v52 = vor.u32 %v4429_v35, %v4037_v49 }
 0x141   :  { %2515 = vmatpush.bf16.msra.mxu3 %v4036_v7  ;;  %v3997_v7 = vld [vmem:[#allocation4 + $0x198] sm:$0xf0] }
 0x142   :  { %2531 = vmatpush.bf16.msrb.mxu0 %v3824_v13  ;;  %v4028_v13 = vor.u32 %v4428_v12, %v4027_v10  ;;  %v4417_v12 = vld [vmem:[#allocation4 + $0x184] sm:$0xf] }
 0x143   :  { %2544 = vmatpush.bf16.msrb.mxu1 %v3888_v14 }
 0x144   :  { %2557 = vmatpush.bf16.msrb.mxu2 %v3952_v53 }
 0x145   :  { %2516 = vmatpush.bf16.msra.mxu3 %v4028_v13  ;;  %v3989_v13 = vld [vmem:[#allocation4 + $0x188] sm:$0xf0] }
 0x146   :  { %2532 = vmatpush.bf16.msrb.mxu0 %v3816_v22  ;;  %v3992_v43 = vor.u32 %v4417_v12, %v3989_v13 }
 0x147   :  { %2545 = vmatpush.bf16.msrb.mxu1 %v3880_v11  ;;  %v4012_v11 = vor.u32 %v4424_v19, %v4011_v18 }
 0x148   :  { %2558 = vmatpush.bf16.msrb.mxu2 %v3944_v61  ;;  %v4021_v61 = vld [vmem:[#allocation4 + $0x1c8] sm:$0xf0] }
 0x149   :  { %v4024_v63 = vor.u32 %v4425_v60, %v4021_v61  ;;  %v4436_v60 = vld [vmem:[%s4747_s5 + $0x18] sm:$0xff] }
 0x14a   :  { %2533 = vmatpush.bf16.msrb.mxu0 %v3808_v41  ;;  %v4420_v41 = vld [vmem:[#allocation4 + $0x194] sm:$0xf0] }
 0x14b   :  { %2546 = vmatpush.bf16.msrb.mxu1 %v3872_v36  ;;  %v3996_v42 = vor.u32 %v4420_v41, %v3995_v34  ;;  %v4418_v36 = vld [vmem:[#allocation4 + $0x184] sm:$0xf0]  ;;  %v2149_v34 = vld [vmem:[%s4746_s4] sm:$0x3] }
 0x14c   :  { %2559 = vmatpush.bf16.msrb.mxu2 %v3936_v1  ;;  %v3988_v44 = vor.u32 %v4418_v36, %v3987_v50  ;;  %v4013_v1 = vld [vmem:[#allocation4 + $0x1b8] sm:$0xf0]  ;;  %v2151_v41 = vperm.slane %v2149_v34, 0  ;;  %v2152_v46 = vperm.slane %v2149_v34, 1 }
 0x14d   :  { %v4016_v3 = vor.u32 %v4423_v25, %v4013_v1  ;;  %v4434_v25 = vld [vmem:[%s4747_s5 + $0x8] sm:$0xff] }
 0x14e   :  { %2534 = vmatpush.bf16.msrb.mxu0 %v3800_v57  ;;  %v1907_v32 = vpop.f32.mrf.mxu0  ;;  %v4032_v57 = vor.u32 %v4427_v54, %v4029_v55  ;;  %v4448_v54 = vld [vmem:[%s4747_s5 + $0x78] sm:$0xff]  ;;  %v4439_v55 = vld [vmem:[%s4747_s5 + $0x30] sm:$0xff]  ;;  %v4446_v1 = vld [vmem:[%s4747_s5 + $0x68] sm:$0xff] }
 0x14f   :  { %2547 = vmatpush.bf16.msrb.mxu1 %v3864_v59  ;;  %v1908_v8 = vadd.f32 %v1907_v32, %v1895_v30  ;;  %v1920_v9 = vpop.f32.mrf.mxu1  ;;  %v4005_v30 = vld [vmem:[#allocation4 + $0x1a8] sm:$0xf0]  ;;  %v4419_v32 = vld [vmem:[#allocation4 + $0x194] sm:$0xf] }
 0x150   :  { %2560 = vmatpush.bf16.msrb.mxu2 %v3928_v5  ;;  %v4421_v5 = vld [vmem:[#allocation4 + $0x1a4] sm:$0xf] }
 0x151   :  { %2535 = vmatmul.bf16.vlgmr.msrb.gmra.mxu0 %v4656_v47  ;;  %v1921_v47 = vadd.f32 %v1920_v9, %v1908_v8  ;;  %v4008_v31 = vor.u32 %v4421_v5, %v4005_v30  ;;  %v4000_v8 = vor.u32 %v4419_v32, %v3997_v7  ;;  %v4443_v5 = vld [vmem:[%s4747_s5 + $0x50] sm:$0xff]  ;;  %v4442_v30 = vld [vmem:[%s4747_s5 + $0x48] sm:$0xff] }
 0x152   :  { %2548 = vmatmul.bf16.vlgmr.msrb.gmra.mxu1 %v4654_v40  ;;  %v4019_v40 = vld [vmem:[#allocation4 + $0x1c0] sm:$0xf] }
 0x153   :  { %v4020_v6 = vor.u32 %v4426_v17, %v4019_v40  ;;  %2738 = vmatpush.bf16.msra.mxu1 %v4448_v54 }
 0x155   :  { %2517 = vmatpush.bf16.msra.mxu3 %v4020_v6 }
 0x156   :  { %v1933_v14 = vpop.f32.mrf.mxu2  ;;  %v1909_v21 = vpop.f32.mrf.mxu0 }
 0x157   :  { %v1934_v15 = vadd.f32 %v1933_v14, %v1921_v47  ;;  %v1946_v16 = vpop.f32.mrf.mxu3  ;;  %v1922_v22 = vpop.f32.mrf.mxu1 }
 0x159   :  { %v1947_v20 = vadd.f32 %v1946_v16, %v1934_v15  ;;  %2518 = vmatpush.bf16.msra.mxu3 %v4012_v11 }
 0x15b   :  { %vm2056_vm3 = vcmp.ge.f32.partialorder %v1947_v20, 0.0  ;;  %v2060_v23 = vmul.f32 0.2, %v1947_v20 }
 0x15d   :  { %v4671_v27 = vsel %vm2056_vm3, %v1947_v20, %v2060_v23  ;;  %2519 = vmatpush.bf16.msra.mxu3 %v4004_v38 }
 0x15e   :  { %v2083_v24 = vpack.c.bf16 %v4671_v27, %v4671_v27  ;;  %v1935_v37 = vpop.f32.mrf.mxu2  ;;  %v2071_v11 = vrot.slane %v4671_v27, 4 }
 0x15f   :  { %v1948_v39 = vpop.f32.mrf.mxu3 }
 0x160   :  { %2509 = vmatmul.bf16.vlgmr.msra.gmra.mxu2 %v2083_v24 }
 0x161   :  { %2520 = vmatpush.bf16.msra.mxu3 %v3996_v42 }
 0x165   :  { %2521 = vmatpush.bf16.msra.mxu3 %v3988_v44 }
 0x169   :  { %2566 = vmatpush.bf16.msrb.mxu3 %v4048_v48 }
 0x16d   :  { %2567 = vmatpush.bf16.msrb.mxu3 %v4040_v52 }
 0x16e   :  { %v1959_v51 = vpop.f32.mrf.mxu0 }
 0x16f   :  { %v1972_v53 = vpop.f32.mrf.mxu1  ;;  %v1960_v26 = vadd.f32 %v1959_v51, %v353_v0 }
 0x170   :  { %2561 = vmatmul.bf16.vlgmr.msrb.gmra.mxu2 %v2083_v24 }
 0x171   :  { %2568 = vmatpush.bf16.msrb.mxu3 %v4032_v57  ;;  %v1973_v9 = vadd.f32 %v1972_v53, %v1960_v26  ;;  %v4440_v53 = vld [vmem:[%s4747_s5 + $0x38] sm:$0xff]  ;;  %v4438_v57 = vld [vmem:[%s4747_s5 + $0x28] sm:$0xff]  ;;  %v4441_v26 = vld [vmem:[%s4747_s5 + $0x40] sm:$0xff] }
 0x172   :  { %2725 = vmatpush.bf16.msra.mxu0 %v4440_v53 }
 0x175   :  { %2569 = vmatpush.bf16.msrb.mxu3 %v4024_v63 }
 0x176   :  { %v1985_v56 = vpop.f32.mrf.mxu2  ;;  %v1961_v59 = vpop.f32.mrf.mxu0  ;;  %2726 = vmatpush.bf16.msra.mxu0 %v4439_v55 }
 0x177   :  { %v1998_v58 = vpop.f32.mrf.mxu3  ;;  %v1974_v62 = vpop.f32.mrf.mxu1  ;;  %v1986_v10 = vadd.f32 %v1985_v56, %v1973_v9  ;;  %v4447_v56 = vld [vmem:[%s4747_s5 + $0x70] sm:$0xff]  ;;  %v4437_v59 = vld [vmem:[%s4747_s5 + $0x20] sm:$0xff] }
 0x178   :  { %2739 = vmatpush.bf16.msra.mxu1 %v4447_v56  ;;  %v4435_v62 = vld [vmem:[%s4747_s5 + $0x10] sm:$0xff] }
 0x179   :  { %2570 = vmatpush.bf16.msrb.mxu3 %v4016_v3  ;;  %v1999_v47 = vadd.f32 %v1998_v58, %v1986_v10  ;;  %v4445_v3 = vld [vmem:[%s4747_s5 + $0x60] sm:$0xff] }
 0x17a   :  { %2727 = vmatpush.bf16.msra.mxu0 %v4438_v57 }
 0x17c   :  { %2740 = vmatpush.bf16.msra.mxu1 %v4446_v1 }
 0x17d   :  { %2571 = vmatpush.bf16.msrb.mxu3 %v4008_v31 }
 0x17e   :  { %v1987_v2 = vpop.f32.mrf.mxu2  ;;  %2728 = vmatpush.bf16.msra.mxu0 %v4437_v59 }
 0x17f   :  { %v2000_v4 = vpop.f32.mrf.mxu3  ;;  %v4433_v2 = vld [vmem:[%s4747_s5] sm:$0xff] }
 0x180   :  { %2741 = vmatpush.bf16.msra.mxu1 %v4445_v3  ;;  %v4444_v4 = vld [vmem:[%s4747_s5 + $0x58] sm:$0xff] }
 0x181   :  { %2572 = vmatpush.bf16.msrb.mxu3 %v4000_v8 }
 0x182   :  { %2729 = vmatpush.bf16.msra.mxu0 %v4436_v60 }
 0x184   :  { %2742 = vmatpush.bf16.msra.mxu1 %v4444_v4 }
 0x185   :  { %2573 = vmatpush.bf16.msrb.mxu3 %v3992_v43 }
 0x186   :  { %2730 = vmatpush.bf16.msra.mxu0 %v4435_v62 }
 0x188   :  { %2743 = vmatpush.bf16.msra.mxu1 %v4443_v5 }
 0x18a   :  { %2731 = vmatpush.bf16.msra.mxu0 %v4434_v25 }
 0x18c   :  { %2744 = vmatpush.bf16.msra.mxu1 %v4442_v30 }
 0x18e   :  { %v2011_v14 = vpop.f32.mrf.mxu0  ;;  %2732 = vmatpush.bf16.msra.mxu0 %v4433_v2 }
 0x18f   :  { %v2024_v15 = vpop.f32.mrf.mxu1  ;;  %v2012_v16 = vadd.f32 %v2011_v14, %v1999_v47 }
 0x190   :  { %2745 = vmatpush.bf16.msra.mxu1 %v4441_v26 }
 0x191   :  { %v2025_v40 = vadd.f32 %v2024_v15, %v2012_v16 }
 0x196   :  { %v2037_v17 = vpop.f32.mrf.mxu2  ;;  %v2013_v19 = vpop.f32.mrf.mxu0 }
 0x197   :  { %v2038_v6 = vadd.f32 %v2037_v17, %v2025_v40  ;;  %v2050_v18 = vpop.f32.mrf.mxu3  ;;  %v2026_v20 = vpop.f32.mrf.mxu1 }
 0x198   :  { %v4455_v20 = vld [vmem:[%s4748_s6] ss:$0 sm:$0xff] }
 0x199   :  { %v2051_v21 = vadd.f32 %v2050_v18, %v2038_v6 }
 0x19b   :  { %vm2057_vm4 = vcmp.ge.f32.partialorder %v2051_v21, 0.0  ;;  %v2061_v22 = vmul.f32 0.2, %v2051_v21 }
 0x19d   :  { %v2065_v23 = vsel %vm2057_vm4, %v2051_v21, %v2061_v22 }
 0x19e   :  { %v2072_v28 = vrot.slane %v2065_v23, 2  ;;  %v2084_v33 = vpack.c.bf16 %v2065_v23, %v2065_v23  ;;  %v2039_v24 = vpop.f32.mrf.mxu2 }
 0x19f   :  { %v2052_v37 = vpop.f32.mrf.mxu3 }
 0x1a0   :  { %v2076_v39 = vsel %vm2075_vm5, %v2071_v11, %v2072_v28  ;;  %2522 = vmatmul.bf16.vlgmr.msra.gmra.mxu3 %v2084_v33 }
 0x1a1   :  { %v2078_v38 = vsel %vm2077_vm6, %v4652_v29, %v2076_v39 }
 0x1a2   :  { %2080 = vst [vmem:[%s4749_s7] sm:$0xff] %v2078_v38 }
 0x1ae   :  { %v2484_v42 = vpop.f32.mrf.mxu0 }
 0x1af   :  { %v2485_v27 = vadd.f32 %v2484_v42, %v2151_v41  ;;  %v2497_v50 = vpop.f32.mrf.mxu1 }
 0x1b0   :  { %2574 = vmatmul.bf16.vlgmr.msrb.gmra.mxu3 %v2084_v33 }
 0x1b1   :  { %v2498_v36 = vadd.f32 %v2497_v50, %v2485_v27 }
 0x1b6   :  { %v2486_v44 = vpop.f32.mrf.mxu0 }
 0x1b7   :  { %v2499_v45 = vpop.f32.mrf.mxu1 }
 0x1ce   :  { %v2536_v48 = vpop.f32.mrf.mxu0 }
 0x1cf   :  { %v2537_v35 = vadd.f32 %v2536_v48, %v2152_v46  ;;  %v2549_v29 = vpop.f32.mrf.mxu1 }
 0x1d1   :  { %v2550_v49 = vadd.f32 %v2549_v29, %v2537_v35 }
 0x1d6   :  { %v2538_v51 = vpop.f32.mrf.mxu0 }
 0x1d7   :  { %v2551_v52 = vpop.f32.mrf.mxu1 }
 0x1e3   :  { %v2510_v58 = vpop.f32.mrf.mxu2 }
 0x1e4   :  { %v2511_v31 = vadd.f32 %v2510_v58, %v2498_v36 }
 0x1eb   :  { %v2512_v61 = vpop.f32.mrf.mxu2 }
 0x1f3   :  { %v2562_v63 = vpop.f32.mrf.mxu2 }
 0x1f4   :  { %v2563_v13 = vadd.f32 %v2562_v63, %v2550_v49 }
 0x1fb   :  { %v2564_v0 = vpop.f32.mrf.mxu2 }
 0x223   :  { %v2523_v32 = vpop.f32.mrf.mxu3 }
 0x224   :  { %v2524_v7 = vadd.f32 %v2523_v32, %v2511_v31 }
 0x226   :  { %vm2579_vm7 = vcmp.ge.f32.partialorder %v2524_v7, 0.0  ;;  %v2581_v8 = vmul.f32 0.2, %v2524_v7 }
 0x228   :  { %v2583_v9 = vsel %vm2579_vm7, %v2524_v7, %v2581_v8 }
 0x229   :  { %v2591_v10 = vpack.c.bf16 %v2583_v9, %v2583_v9 }
 0x22b   :  { %v2525_v12 = vpop.f32.mrf.mxu3  ;;  %2733 = vmatmul.bf16.vlgmr.msra.gmra.mxu0 %v2591_v10 }
 0x233   :  { %v2575_v43 = vpop.f32.mrf.mxu3 }
 0x234   :  { %v2576_v47 = vadd.f32 %v2575_v43, %v2563_v13 }
 0x236   :  { %vm2580_vm8 = vcmp.ge.f32.partialorder %v2576_v47, 0.0  ;;  %v2582_v14 = vmul.f32 0.2, %v2576_v47 }
 0x238   :  { %v2584_v15 = vsel %vm2580_vm8, %v2576_v47, %v2582_v14 }
 0x239   :  { %v2587_v16 = vrot.slane %v2584_v15, 6  ;;  %v2592_v40 = vpack.c.bf16 %v2584_v15, %v2584_v15 }
 0x23b   :  { %v2588_v17 = vsel %vm2073_vm2, %v2583_v9, %v2587_v16  ;;  %v2577_v6 = vpop.f32.mrf.mxu3  ;;  %2746 = vmatmul.bf16.vlgmr.msra.gmra.mxu1 %v2592_v40 }
 0x23c   :  { %2590 = vst [vmem:[%s4750_s8] sm:$0xf] %v2588_v17 }
 0x2a8   :  { %v2734_v18 = vpop.f32.mrf.mxu0 }
 0x2a9   :  { %v2735_v21 = vadd.f32 %v4455_v20, %v2734_v18 }
 0x2b0   :  { %v2736_v19 = vpop.f32.mrf.mxu0 }
 0x2b8   :  { %v2747_v22 = vpop.f32.mrf.mxu1 }
 0x2b9   :  { %v2748_v23 = vadd.f32 %v2747_v22, %v2735_v21 }
 0x2bb   :  { %vm2751_vm9 = vcmp.ge.f32.partialorder %v2748_v23, 0.0  ;;  %v2752_v11 = vmul.f32 0.2, %v2748_v23 }
 0x2bd   :  { %v2753_v28 = vsel %vm2751_vm9, %v2748_v23, %v2752_v11 }
 0x2be   :  { %2754 = vst [vmem:[%s4751_s9] sm:$0x3] %v2753_v28 }
 0x2c0   :  { %v2749_v33 = vpop.f32.mrf.mxu1 }
 0x2c1   :  { %2767 = vsyncpa [#allocation3], 1 }
 0x2c2   :  { %2768 = vsyncpa [#allocation5], 1 }

</bundles_post_ra>
